<compile_context>
chip_gen: v7x
topology: tpu7x:2x2x1
jax: 0.10.0
libtpu: 0.0.40
codegen_flags: <defaults>
</compile_context>

<pallas_src>
import functools

import jax
import jax.numpy as jnp
from jax.experimental import pallas as pl
from jax.experimental.pallas import tpu as pltpu

# ----------------------- scaled-down EventNet config -------------------------
EVENT_FRAMES = 4            # event_frames_per_video_frame (conv in-channels)
CONV_K = 3                  # conv_kernel_size (padding='same'; odd K assumed)
IN_SPATIAL = (16, 32)       # resolution of the event frames fed to the conv
VIDEO_SHAPE = (32, 64)      # video_shape (integer 2x upsample of IN_SPATIAL)
UNFOLD_K = 8                # unfold_kernel_size == unfold stride
RNN_BATCH = UNFOLD_K ** 2                       # 64   ("batch" axis of the RNN)
VIDEO_SIZE = VIDEO_SHAPE[0] * VIDEO_SHAPE[1]    # 2048
HIDDEN = VIDEO_SIZE // RNN_BATCH                # 32   (RNN input & hidden size)
RNN_LANE = 128                                  # pad hidden/input to full lanes


def _round_up(v, m):
    return (v + m - 1) // m * m


def _rnn_batch_split(batch):
    """Split the independent RNN batch across TensorCores ONLY on multi-TC chips.

    The recurrence is inherently serial; on single-TC v5e/v6e a split would run
    the two T-step chains back-to-back (~2x RNN wall time), so default to 1
    there and only split on v7x-style 2-TC chips.  Best-effort detection via
    pltpu.get_tpu_info() with a device_kind fallback.
    """
    n_tc = 1
    try:
        info = pltpu.get_tpu_info()
        for attr in ("num_cores", "num_tensorcores", "tensorcore_count",
                     "cores_per_chip", "num_cores_per_chip"):
            v = getattr(info, attr, None)
            if v:
                n_tc = int(v)
                break
    except Exception:
        pass
    if n_tc <= 1:
        try:
            if "v7" in jax.devices()[0].device_kind.lower():
                n_tc = 2
        except Exception:
            pass
    split = 2 if n_tc >= 2 else 1
    if batch % split != 0 or (batch // split) % 8 != 0:
        split = 1
    return split


# ------------------------------- conv kernel ---------------------------------
def _conv2d_same_kernel(xp_ref, w_ref, b_ref, o_ref):
    """One video frame per grid step (N is a 'parallel' grid axis).

    xp_ref: (C, H+2p, W+2p) zero-padded event frames for this video frame (VMEM)
    w_ref : (C*K*K,) flat conv weight (SMEM scalars)
    b_ref : (1,) conv bias (SMEM)
    o_ref : (H, W) single-out-channel result for this frame
    """
    H, W = o_ref.shape
    C, Hp, _ = xp_ref.shape
    K = Hp - H + 1
    xp = xp_ref[...]
    acc = jnp.zeros((H, W), jnp.float32)
    # TODO(synk): production scale (1080x1920, C=35, K=9):
    #   * add a row-strip grid axis with a (K-1)-row halo and set
    #     vmem_limit_bytes (strips ~half the size on v7x's 64 MiB VMEM),
    #   * turn the channel loop into lax.fori_loop (modest unroll) to bound
    #     traced size / vreg live ranges,
    #   * replace the j lane-shift slices with pltpu.roll on the lane-dense
    #     W=1920 strips (XLU slot is idle here),
    #   * do tap math in bf16 on v6e/v7x (keep f32 on v5e),
    #   * present a lane-dense output slab if W were small.
    for c in range(C):
        for i in range(K):
            for j in range(K):
                acc = acc + xp[c, i:i + H, j:j + W] * w_ref[(c * K + i) * K + j]
    o_ref[...] = acc + b_ref[0]


def conv2d_same(x, w, b):
    """PyTorch Conv2d(C_in, 1, K, padding='same'), NCHW, stride 1 -> (N, H, W)."""
    N, C, H, W = x.shape
    K = w.shape[-1]
    p = (K - 1) // 2                      # 'same' padding for odd K
    xp = jnp.pad(x, ((0, 0), (0, 0), (p, p), (p, p)))
    return pl.pallas_call(
        _conv2d_same_kernel,
        out_shape=jax.ShapeDtypeStruct((N, H, W), jnp.float32),
        grid_spec=pltpu.PrefetchScalarGridSpec(
            num_scalar_prefetch=0,
            grid=(N,),
            in_specs=[
                pl.BlockSpec((None, C, H + 2 * p, W + 2 * p),
                             lambda n: (n, 0, 0, 0)),
                pl.BlockSpec(memory_space=pltpu.MemorySpace.SMEM),
                pl.BlockSpec(memory_space=pltpu.MemorySpace.SMEM),
            ],
            out_specs=pl.BlockSpec((None, H, W), lambda n: (n, 0, 0)),
        ),
        compiler_params=pltpu.CompilerParams(
            dimension_semantics=("parallel",)),
    )(xp, w.reshape(-1), b)


# -------------------------------- RNN kernel ----------------------------------
def _rnn_kernel(x_ref, h0_ref, wih_ref, whh_ref, b_ref, o_ref):
    """Elman RNN:  h_t = tanh(x_t @ W_ih^T + b_ih + b_hh + h_{t-1} @ W_hh^T).

    x_ref  : (T*Bs, IP)  bf16, pre-flattened + lane-padded input
    h0_ref : (Bs, HdP)   f32
    wih_ref: (IP, HdP)   bf16
    whh_ref: (HdP, HdP)  f32  (recurrence kept in f32: bf16 rounding of h would
                               compound over T)
    b_ref  : (1, HdP)    f32  (b_ih + b_hh)
    o_ref  : (T, Bs, HdP) f32

    The input projection for all T steps is one MXU matmul (M = T*Bs) kept in
    values; the serial loop then only performs the (Bs,HdP)x(HdP,HdP)
    recurrence matmul and stores h_t once per step.
    """
    T, Bs, _ = o_ref.shape

    xproj = jnp.dot(x_ref[...], wih_ref[...],
                    preferred_element_type=jnp.float32) + b_ref[...]

    # TODO(synk): at production (T~35, B=1600, HdP=1408) tile T as an
    # 'arbitrary' grid axis carrying h in persistent VMEM scratch (P3), tile B
    # on the 'parallel' axis, set vmem_limit_bytes, cap the unroll, and pick
    # 256-aligned HdP tiles for the v6e/v7x MXU.
    h = h0_ref[...]
    for t in range(T):                                  # T is tiny at demo scale
        pre = xproj[t * Bs:(t + 1) * Bs, :] + jnp.dot(
            h, whh_ref[...], preferred_element_type=jnp.float32)
        h = jnp.tanh(pre)
        o_ref[t] = h


def rnn_forward(x, h0, w_ih, w_hh, b_ih, b_hh):
    """x: (T, B, I), h0: (1, B, Hd) -> output (T, B, Hd)."""
    T, B, I = x.shape
    Hd = h0.shape[-1]
    HdP = _round_up(Hd, RNN_LANE)     # lane-dense hidden width
    IP = _round_up(I, RNN_LANE)       # lane-dense input width

    S = _rnn_batch_split(B)           # 1 on v5e/v6e, 2 on multi-TC (v7x)
    Bs = B // S

    # Zero-pad hidden/input axes so every MXU tile and every store is full-lane.
    # Padded columns stay exactly 0 through tanh, so results are unchanged.
    wih_t = jnp.pad(w_ih.T, ((0, IP - I), (0, HdP - Hd))).astype(jnp.bfloat16)
    whh_t = jnp.pad(w_hh.T, ((0, HdP - Hd), (0, HdP - Hd))).astype(jnp.float32)
    bias = jnp.pad((b_ih + b_hh).reshape(1, Hd),
                   ((0, 0), (0, HdP - Hd))).astype(jnp.float32)
    h0p = jnp.pad(h0[0], ((0, 0), (0, HdP - Hd))).astype(jnp.float32)

    # Pre-flatten + lane-pad the RNN input wrapper-side, grouped by batch split
    # so each grid step's block is contiguous -> no in-kernel reshape/relayout.
    xp = jnp.pad(x, ((0, 0), (0, 0), (0, IP - I))).astype(jnp.bfloat16)
    xp = xp.reshape(T, S, Bs, IP).transpose(1, 0, 2, 3).reshape(S, T * Bs, IP)

    out = pl.pallas_call(
        _rnn_kernel,
        out_shape=jax.ShapeDtypeStruct((T, B, HdP), jnp.float32),
        grid_spec=pltpu.PrefetchScalarGridSpec(
            num_scalar_prefetch=0,
            grid=(S,),
            in_specs=[
                pl.BlockSpec((None, T * Bs, IP), lambda s: (s, 0, 0)),
                pl.BlockSpec((Bs, HdP), lambda s: (s, 0)),
                pl.BlockSpec((IP, HdP), lambda s: (0, 0)),
                pl.BlockSpec((HdP, HdP), lambda s: (0, 0)),
                pl.BlockSpec((1, HdP), lambda s: (0, 0)),
            ],
            out_specs=pl.BlockSpec((T, Bs, HdP), lambda s: (0, s, 0)),
        ),
        compiler_params=pltpu.CompilerParams(
            dimension_semantics=("parallel",)),
    )(xp, h0p, wih_t, whh_t, bias)
    return out[:, :, :Hd]


# ------------------------------ glue (data movement) --------------------------
def upsample_unfold(y, size, k):
    """Upsample(size, 'nearest') + Unfold(k, stride=k): (N,H,W) -> (N, k*k, L).

    TODO(synk): at production scale fuse this into the conv output layout (or
    the RNN input BlockSpec index_map, which is affine) to avoid a full HBM
    round trip of the (N,1080,1920) f32 intermediate; at demo size XLA fuses
    the repeat/reshape/transpose into one copy.
    """
    N, H, W = y.shape
    Hv, Wv = size
    sh, sw = Hv // H, Wv // W
    assert H * sh == Hv and W * sw == Wv
    y = jnp.repeat(jnp.repeat(y, sh, axis=1), sw, axis=2)      # (N, Hv, Wv)
    Hb, Wb = Hv // k, Wv // k
    y = y.reshape(N, Hb, k, Wb, k)
    y = jnp.transpose(y, (0, 2, 4, 1, 3))                      # (N, k, k, Hb, Wb)
    return y.reshape(N, k * k, Hb * Wb)


# ------------------------------- full forward ---------------------------------
def event_net_forward(x, params):
    # x: (N, EVENT_FRAMES, Hin, Win)  -- N plays the role of seq_len for the RNN
    y = conv2d_same(x, params["conv_w"], params["conv_b"])        # (N, Hin, Win)
    cols = upsample_unfold(y, VIDEO_SHAPE, UNFOLD_K)              # (N, k*k, L)
    out = rnn_forward(cols, params["h0"], params["w_ih"], params["w_hh"],
                      params["b_ih"], params["b_hh"])             # (N, k*k, Hd)
    # TODO(synk): the PyTorch module also stores the new (detached) hidden state
    # on `self`; we only return the forward output, matching forward()'s return.
    # The final reshape matches PyTorch's raw `x.reshape(-1, *video_shape)`
    # (it is NOT an nn.Fold / inverse unfold).
    return out.reshape(-1, *VIDEO_SHAPE)                          # (N, Hv, Wv)


def init_params(key):
    ks = jax.random.split(key, 7)
    s = 1.0 / jnp.sqrt(jnp.float32(HIDDEN))
    return dict(
        conv_w=0.1 * jax.random.normal(ks[0], (1, EVENT_FRAMES, CONV_K, CONV_K), jnp.float32),
        conv_b=0.1 * jax.random.normal(ks[1], (1,), jnp.float32),
        w_ih=s * jax.random.normal(ks[2], (HIDDEN, HIDDEN), jnp.float32),
        w_hh=s * jax.random.normal(ks[3], (HIDDEN, HIDDEN), jnp.float32),
        b_ih=0.1 * jax.random.normal(ks[4], (HIDDEN,), jnp.float32),
        b_hh=0.1 * jax.random.normal(ks[5], (HIDDEN,), jnp.float32),
        h0=jax.random.uniform(ks[6], (1, RNN_BATCH, HIDDEN), jnp.float32),  # torch.rand
    )


if __name__ == "__main__":
    key = jax.random.PRNGKey(0)
    pkey, xkey = jax.random.split(key)
    params = init_params(pkey)

    N = 2  # number of video frames (seq_len for the RNN)
    x = jax.random.normal(xkey, (N, EVENT_FRAMES, *IN_SPATIAL), jnp.float32)

    fwd = jax.jit(functools.partial(event_net_forward, params=params))
    out = jax.block_until_ready(fwd(x))

    assert out.shape == (N, *VIDEO_SHAPE), out.shape
    assert out.dtype == jnp.float32
    assert bool(jnp.all(jnp.isfinite(out)))
    print("KERNEL_OK")
</pallas_src>

<mosaic_0001>
module attributes {stable_mosaic.version = 11 : i64} {
  func.func @_conv2d_same_kernel(%arg0: i32, %arg1: memref<1x4x18x34xf32, #tpu.memory_space<vmem>>, %arg2: memref<36xf32, #tpu.memory_space<smem>>, %arg3: memref<1xf32, #tpu.memory_space<smem>>, %arg4: memref<1x16x32xf32, #tpu.memory_space<vmem>>) attributes {dimension_semantics = [#tpu.dimension_semantics<parallel>], iteration_bounds = array<i64: 2>, scalar_prefetch = 0 : i64, scratch_operands = 0 : i64, tpu.core_type = #tpu.core_type<tc>, window_params = [{transform_indices = @transform_0, window_bounds = array<i64: 1, 4, 18, 34>}, {transform_indices = @transform_1, window_bounds = array<i64: 36>}, {transform_indices = @transform_2, window_bounds = array<i64: 1>}, {transform_indices = @transform_3, window_bounds = array<i64: 1, 16, 32>}]} {
    %c0 = arith.constant 0 : index
    %c0_0 = arith.constant 0 : index
    %c0_1 = arith.constant 0 : index
    %c0_2 = arith.constant 0 : index
    %0 = vector.load %arg1[%c0, %c0_0, %c0_1, %c0_2] : memref<1x4x18x34xf32, #tpu.memory_space<vmem>>, vector<1x4x18x34xf32>
    %1 = vector.shape_cast %0 : vector<1x4x18x34xf32> to vector<4x18x34xf32>
    %cst = arith.constant 0.000000e+00 : f32
    %2 = vector.broadcast %cst : f32 to vector<16x32xf32>
    %3 = vector.extract_strided_slice %1 {offsets = [0, 0, 0], sizes = [1, 16, 32], strides = [1, 1, 1]} : vector<4x18x34xf32> to vector<1x16x32xf32>
    %4 = vector.shape_cast %3 : vector<1x16x32xf32> to vector<16x32xf32>
    %c0_3 = arith.constant 0 : index
    %5 = memref.load %arg2[%c0_3] : memref<36xf32, #tpu.memory_space<smem>>
    %6 = vector.broadcast %5 : f32 to vector<16x32xf32>
    %7 = arith.mulf %4, %6 : vector<16x32xf32>
    %8 = arith.addf %2, %7 : vector<16x32xf32>
    %9 = vector.extract_strided_slice %1 {offsets = [0, 0, 1], sizes = [1, 16, 32], strides = [1, 1, 1]} : vector<4x18x34xf32> to vector<1x16x32xf32>
    %10 = vector.shape_cast %9 : vector<1x16x32xf32> to vector<16x32xf32>
    %c1 = arith.constant 1 : index
    %11 = memref.load %arg2[%c1] : memref<36xf32, #tpu.memory_space<smem>>
    %12 = vector.broadcast %11 : f32 to vector<16x32xf32>
    %13 = arith.mulf %10, %12 : vector<16x32xf32>
    %14 = arith.addf %8, %13 : vector<16x32xf32>
    %15 = vector.extract_strided_slice %1 {offsets = [0, 0, 2], sizes = [1, 16, 32], strides = [1, 1, 1]} : vector<4x18x34xf32> to vector<1x16x32xf32>
    %16 = vector.shape_cast %15 : vector<1x16x32xf32> to vector<16x32xf32>
    %c2 = arith.constant 2 : index
    %17 = memref.load %arg2[%c2] : memref<36xf32, #tpu.memory_space<smem>>
    %18 = vector.broadcast %17 : f32 to vector<16x32xf32>
    %19 = arith.mulf %16, %18 : vector<16x32xf32>
    %20 = arith.addf %14, %19 : vector<16x32xf32>
    %21 = vector.extract_strided_slice %1 {offsets = [0, 1, 0], sizes = [1, 16, 32], strides = [1, 1, 1]} : vector<4x18x34xf32> to vector<1x16x32xf32>
    %22 = vector.shape_cast %21 : vector<1x16x32xf32> to vector<16x32xf32>
    %c3 = arith.constant 3 : index
    %23 = memref.load %arg2[%c3] : memref<36xf32, #tpu.memory_space<smem>>
    %24 = vector.broadcast %23 : f32 to vector<16x32xf32>
    %25 = arith.mulf %22, %24 : vector<16x32xf32>
    %26 = arith.addf %20, %25 : vector<16x32xf32>
    %27 = vector.extract_strided_slice %1 {offsets = [0, 1, 1], sizes = [1, 16, 32], strides = [1, 1, 1]} : vector<4x18x34xf32> to vector<1x16x32xf32>
    %28 = vector.shape_cast %27 : vector<1x16x32xf32> to vector<16x32xf32>
    %c4 = arith.constant 4 : index
    %29 = memref.load %arg2[%c4] : memref<36xf32, #tpu.memory_space<smem>>
    %30 = vector.broadcast %29 : f32 to vector<16x32xf32>
    %31 = arith.mulf %28, %30 : vector<16x32xf32>
    %32 = arith.addf %26, %31 : vector<16x32xf32>
    %33 = vector.extract_strided_slice %1 {offsets = [0, 1, 2], sizes = [1, 16, 32], strides = [1, 1, 1]} : vector<4x18x34xf32> to vector<1x16x32xf32>
    %34 = vector.shape_cast %33 : vector<1x16x32xf32> to vector<16x32xf32>
    %c5 = arith.constant 5 : index
    %35 = memref.load %arg2[%c5] : memref<36xf32, #tpu.memory_space<smem>>
    %36 = vector.broadcast %35 : f32 to vector<16x32xf32>
    %37 = arith.mulf %34, %36 : vector<16x32xf32>
    %38 = arith.addf %32, %37 : vector<16x32xf32>
    %39 = vector.extract_strided_slice %1 {offsets = [0, 2, 0], sizes = [1, 16, 32], strides = [1, 1, 1]} : vector<4x18x34xf32> to vector<1x16x32xf32>
    %40 = vector.shape_cast %39 : vector<1x16x32xf32> to vector<16x32xf32>
    %c6 = arith.constant 6 : index
    %41 = memref.load %arg2[%c6] : memref<36xf32, #tpu.memory_space<smem>>
    %42 = vector.broadcast %41 : f32 to vector<16x32xf32>
    %43 = arith.mulf %40, %42 : vector<16x32xf32>
    %44 = arith.addf %38, %43 : vector<16x32xf32>
    %45 = vector.extract_strided_slice %1 {offsets = [0, 2, 1], sizes = [1, 16, 32], strides = [1, 1, 1]} : vector<4x18x34xf32> to vector<1x16x32xf32>
    %46 = vector.shape_cast %45 : vector<1x16x32xf32> to vector<16x32xf32>
    %c7 = arith.constant 7 : index
    %47 = memref.load %arg2[%c7] : memref<36xf32, #tpu.memory_space<smem>>
    %48 = vector.broadcast %47 : f32 to vector<16x32xf32>
    %49 = arith.mulf %46, %48 : vector<16x32xf32>
    %50 = arith.addf %44, %49 : vector<16x32xf32>
    %51 = vector.extract_strided_slice %1 {offsets = [0, 2, 2], sizes = [1, 16, 32], strides = [1, 1, 1]} : vector<4x18x34xf32> to vector<1x16x32xf32>
    %52 = vector.shape_cast %51 : vector<1x16x32xf32> to vector<16x32xf32>
    %c8 = arith.constant 8 : index
    %53 = memref.load %arg2[%c8] : memref<36xf32, #tpu.memory_space<smem>>
    %54 = vector.broadcast %53 : f32 to vector<16x32xf32>
    %55 = arith.mulf %52, %54 : vector<16x32xf32>
    %56 = arith.addf %50, %55 : vector<16x32xf32>
    %57 = vector.extract_strided_slice %1 {offsets = [1, 0, 0], sizes = [1, 16, 32], strides = [1, 1, 1]} : vector<4x18x34xf32> to vector<1x16x32xf32>
    %58 = vector.shape_cast %57 : vector<1x16x32xf32> to vector<16x32xf32>
    %c9 = arith.constant 9 : index
    %59 = memref.load %arg2[%c9] : memref<36xf32, #tpu.memory_space<smem>>
    %60 = vector.broadcast %59 : f32 to vector<16x32xf32>
    %61 = arith.mulf %58, %60 : vector<16x32xf32>
    %62 = arith.addf %56, %61 : vector<16x32xf32>
    %63 = vector.extract_strided_slice %1 {offsets = [1, 0, 1], sizes = [1, 16, 32], strides = [1, 1, 1]} : vector<4x18x34xf32> to vector<1x16x32xf32>
    %64 = vector.shape_cast %63 : vector<1x16x32xf32> to vector<16x32xf32>
    %c10 = arith.constant 10 : index
    %65 = memref.load %arg2[%c10] : memref<36xf32, #tpu.memory_space<smem>>
    %66 = vector.broadcast %65 : f32 to vector<16x32xf32>
    %67 = arith.mulf %64, %66 : vector<16x32xf32>
    %68 = arith.addf %62, %67 : vector<16x32xf32>
    %69 = vector.extract_strided_slice %1 {offsets = [1, 0, 2], sizes = [1, 16, 32], strides = [1, 1, 1]} : vector<4x18x34xf32> to vector<1x16x32xf32>
    %70 = vector.shape_cast %69 : vector<1x16x32xf32> to vector<16x32xf32>
    %c11 = arith.constant 11 : index
    %71 = memref.load %arg2[%c11] : memref<36xf32, #tpu.memory_space<smem>>
    %72 = vector.broadcast %71 : f32 to vector<16x32xf32>
    %73 = arith.mulf %70, %72 : vector<16x32xf32>
    %74 = arith.addf %68, %73 : vector<16x32xf32>
    %75 = vector.extract_strided_slice %1 {offsets = [1, 1, 0], sizes = [1, 16, 32], strides = [1, 1, 1]} : vector<4x18x34xf32> to vector<1x16x32xf32>
    %76 = vector.shape_cast %75 : vector<1x16x32xf32> to vector<16x32xf32>
    %c12 = arith.constant 12 : index
    %77 = memref.load %arg2[%c12] : memref<36xf32, #tpu.memory_space<smem>>
    %78 = vector.broadcast %77 : f32 to vector<16x32xf32>
    %79 = arith.mulf %76, %78 : vector<16x32xf32>
    %80 = arith.addf %74, %79 : vector<16x32xf32>
    %81 = vector.extract_strided_slice %1 {offsets = [1, 1, 1], sizes = [1, 16, 32], strides = [1, 1, 1]} : vector<4x18x34xf32> to vector<1x16x32xf32>
    %82 = vector.shape_cast %81 : vector<1x16x32xf32> to vector<16x32xf32>
    %c13 = arith.constant 13 : index
    %83 = memref.load %arg2[%c13] : memref<36xf32, #tpu.memory_space<smem>>
    %84 = vector.broadcast %83 : f32 to vector<16x32xf32>
    %85 = arith.mulf %82, %84 : vector<16x32xf32>
    %86 = arith.addf %80, %85 : vector<16x32xf32>
    %87 = vector.extract_strided_slice %1 {offsets = [1, 1, 2], sizes = [1, 16, 32], strides = [1, 1, 1]} : vector<4x18x34xf32> to vector<1x16x32xf32>
    %88 = vector.shape_cast %87 : vector<1x16x32xf32> to vector<16x32xf32>
    %c14 = arith.constant 14 : index
    %89 = memref.load %arg2[%c14] : memref<36xf32, #tpu.memory_space<smem>>
    %90 = vector.broadcast %89 : f32 to vector<16x32xf32>
    %91 = arith.mulf %88, %90 : vector<16x32xf32>
    %92 = arith.addf %86, %91 : vector<16x32xf32>
    %93 = vector.extract_strided_slice %1 {offsets = [1, 2, 0], sizes = [1, 16, 32], strides = [1, 1, 1]} : vector<4x18x34xf32> to vector<1x16x32xf32>
    %94 = vector.shape_cast %93 : vector<1x16x32xf32> to vector<16x32xf32>
    %c15 = arith.constant 15 : index
    %95 = memref.load %arg2[%c15] : memref<36xf32, #tpu.memory_space<smem>>
    %96 = vector.broadcast %95 : f32 to vector<16x32xf32>
    %97 = arith.mulf %94, %96 : vector<16x32xf32>
    %98 = arith.addf %92, %97 : vector<16x32xf32>
    %99 = vector.extract_strided_slice %1 {offsets = [1, 2, 1], sizes = [1, 16, 32], strides = [1, 1, 1]} : vector<4x18x34xf32> to vector<1x16x32xf32>
    %100 = vector.shape_cast %99 : vector<1x16x32xf32> to vector<16x32xf32>
    %c16 = arith.constant 16 : index
    %101 = memref.load %arg2[%c16] : memref<36xf32, #tpu.memory_space<smem>>
    %102 = vector.broadcast %101 : f32 to vector<16x32xf32>
    %103 = arith.mulf %100, %102 : vector<16x32xf32>
    %104 = arith.addf %98, %103 : vector<16x32xf32>
    %105 = vector.extract_strided_slice %1 {offsets = [1, 2, 2], sizes = [1, 16, 32], strides = [1, 1, 1]} : vector<4x18x34xf32> to vector<1x16x32xf32>
    %106 = vector.shape_cast %105 : vector<1x16x32xf32> to vector<16x32xf32>
    %c17 = arith.constant 17 : index
    %107 = memref.load %arg2[%c17] : memref<36xf32, #tpu.memory_space<smem>>
    %108 = vector.broadcast %107 : f32 to vector<16x32xf32>
    %109 = arith.mulf %106, %108 : vector<16x32xf32>
    %110 = arith.addf %104, %109 : vector<16x32xf32>
    %111 = vector.extract_strided_slice %1 {offsets = [2, 0, 0], sizes = [1, 16, 32], strides = [1, 1, 1]} : vector<4x18x34xf32> to vector<1x16x32xf32>
    %112 = vector.shape_cast %111 : vector<1x16x32xf32> to vector<16x32xf32>
    %c18 = arith.constant 18 : index
    %113 = memref.load %arg2[%c18] : memref<36xf32, #tpu.memory_space<smem>>
    %114 = vector.broadcast %113 : f32 to vector<16x32xf32>
    %115 = arith.mulf %112, %114 : vector<16x32xf32>
    %116 = arith.addf %110, %115 : vector<16x32xf32>
    %117 = vector.extract_strided_slice %1 {offsets = [2, 0, 1], sizes = [1, 16, 32], strides = [1, 1, 1]} : vector<4x18x34xf32> to vector<1x16x32xf32>
    %118 = vector.shape_cast %117 : vector<1x16x32xf32> to vector<16x32xf32>
    %c19 = arith.constant 19 : index
    %119 = memref.load %arg2[%c19] : memref<36xf32, #tpu.memory_space<smem>>
    %120 = vector.broadcast %119 : f32 to vector<16x32xf32>
    %121 = arith.mulf %118, %120 : vector<16x32xf32>
    %122 = arith.addf %116, %121 : vector<16x32xf32>
    %123 = vector.extract_strided_slice %1 {offsets = [2, 0, 2], sizes = [1, 16, 32], strides = [1, 1, 1]} : vector<4x18x34xf32> to vector<1x16x32xf32>
    %124 = vector.shape_cast %123 : vector<1x16x32xf32> to vector<16x32xf32>
    %c20 = arith.constant 20 : index
    %125 = memref.load %arg2[%c20] : memref<36xf32, #tpu.memory_space<smem>>
    %126 = vector.broadcast %125 : f32 to vector<16x32xf32>
    %127 = arith.mulf %124, %126 : vector<16x32xf32>
    %128 = arith.addf %122, %127 : vector<16x32xf32>
    %129 = vector.extract_strided_slice %1 {offsets = [2, 1, 0], sizes = [1, 16, 32], strides = [1, 1, 1]} : vector<4x18x34xf32> to vector<1x16x32xf32>
    %130 = vector.shape_cast %129 : vector<1x16x32xf32> to vector<16x32xf32>
    %c21 = arith.constant 21 : index
    %131 = memref.load %arg2[%c21] : memref<36xf32, #tpu.memory_space<smem>>
    %132 = vector.broadcast %131 : f32 to vector<16x32xf32>
    %133 = arith.mulf %130, %132 : vector<16x32xf32>
    %134 = arith.addf %128, %133 : vector<16x32xf32>
    %135 = vector.extract_strided_slice %1 {offsets = [2, 1, 1], sizes = [1, 16, 32], strides = [1, 1, 1]} : vector<4x18x34xf32> to vector<1x16x32xf32>
    %136 = vector.shape_cast %135 : vector<1x16x32xf32> to vector<16x32xf32>
    %c22 = arith.constant 22 : index
    %137 = memref.load %arg2[%c22] : memref<36xf32, #tpu.memory_space<smem>>
    %138 = vector.broadcast %137 : f32 to vector<16x32xf32>
    %139 = arith.mulf %136, %138 : vector<16x32xf32>
    %140 = arith.addf %134, %139 : vector<16x32xf32>
    %141 = vector.extract_strided_slice %1 {offsets = [2, 1, 2], sizes = [1, 16, 32], strides = [1, 1, 1]} : vector<4x18x34xf32> to vector<1x16x32xf32>
    %142 = vector.shape_cast %141 : vector<1x16x32xf32> to vector<16x32xf32>
    %c23 = arith.constant 23 : index
    %143 = memref.load %arg2[%c23] : memref<36xf32, #tpu.memory_space<smem>>
    %144 = vector.broadcast %143 : f32 to vector<16x32xf32>
    %145 = arith.mulf %142, %144 : vector<16x32xf32>
    %146 = arith.addf %140, %145 : vector<16x32xf32>
    %147 = vector.extract_strided_slice %1 {offsets = [2, 2, 0], sizes = [1, 16, 32], strides = [1, 1, 1]} : vector<4x18x34xf32> to vector<1x16x32xf32>
    %148 = vector.shape_cast %147 : vector<1x16x32xf32> to vector<16x32xf32>
    %c24 = arith.constant 24 : index
    %149 = memref.load %arg2[%c24] : memref<36xf32, #tpu.memory_space<smem>>
    %150 = vector.broadcast %149 : f32 to vector<16x32xf32>
    %151 = arith.mulf %148, %150 : vector<16x32xf32>
    %152 = arith.addf %146, %151 : vector<16x32xf32>
    %153 = vector.extract_strided_slice %1 {offsets = [2, 2, 1], sizes = [1, 16, 32], strides = [1, 1, 1]} : vector<4x18x34xf32> to vector<1x16x32xf32>
    %154 = vector.shape_cast %153 : vector<1x16x32xf32> to vector<16x32xf32>
    %c25 = arith.constant 25 : index
    %155 = memref.load %arg2[%c25] : memref<36xf32, #tpu.memory_space<smem>>
    %156 = vector.broadcast %155 : f32 to vector<16x32xf32>
    %157 = arith.mulf %154, %156 : vector<16x32xf32>
    %158 = arith.addf %152, %157 : vector<16x32xf32>
    %159 = vector.extract_strided_slice %1 {offsets = [2, 2, 2], sizes = [1, 16, 32], strides = [1, 1, 1]} : vector<4x18x34xf32> to vector<1x16x32xf32>
    %160 = vector.shape_cast %159 : vector<1x16x32xf32> to vector<16x32xf32>
    %c26 = arith.constant 26 : index
    %161 = memref.load %arg2[%c26] : memref<36xf32, #tpu.memory_space<smem>>
    %162 = vector.broadcast %161 : f32 to vector<16x32xf32>
    %163 = arith.mulf %160, %162 : vector<16x32xf32>
    %164 = arith.addf %158, %163 : vector<16x32xf32>
    %165 = vector.extract_strided_slice %1 {offsets = [3, 0, 0], sizes = [1, 16, 32], strides = [1, 1, 1]} : vector<4x18x34xf32> to vector<1x16x32xf32>
    %166 = vector.shape_cast %165 : vector<1x16x32xf32> to vector<16x32xf32>
    %c27 = arith.constant 27 : index
    %167 = memref.load %arg2[%c27] : memref<36xf32, #tpu.memory_space<smem>>
    %168 = vector.broadcast %167 : f32 to vector<16x32xf32>
    %169 = arith.mulf %166, %168 : vector<16x32xf32>
    %170 = arith.addf %164, %169 : vector<16x32xf32>
    %171 = vector.extract_strided_slice %1 {offsets = [3, 0, 1], sizes = [1, 16, 32], strides = [1, 1, 1]} : vector<4x18x34xf32> to vector<1x16x32xf32>
    %172 = vector.shape_cast %171 : vector<1x16x32xf32> to vector<16x32xf32>
    %c28 = arith.constant 28 : index
    %173 = memref.load %arg2[%c28] : memref<36xf32, #tpu.memory_space<smem>>
    %174 = vector.broadcast %173 : f32 to vector<16x32xf32>
    %175 = arith.mulf %172, %174 : vector<16x32xf32>
    %176 = arith.addf %170, %175 : vector<16x32xf32>
    %177 = vector.extract_strided_slice %1 {offsets = [3, 0, 2], sizes = [1, 16, 32], strides = [1, 1, 1]} : vector<4x18x34xf32> to vector<1x16x32xf32>
    %178 = vector.shape_cast %177 : vector<1x16x32xf32> to vector<16x32xf32>
    %c29 = arith.constant 29 : index
    %179 = memref.load %arg2[%c29] : memref<36xf32, #tpu.memory_space<smem>>
    %180 = vector.broadcast %179 : f32 to vector<16x32xf32>
    %181 = arith.mulf %178, %180 : vector<16x32xf32>
    %182 = arith.addf %176, %181 : vector<16x32xf32>
    %183 = vector.extract_strided_slice %1 {offsets = [3, 1, 0], sizes = [1, 16, 32], strides = [1, 1, 1]} : vector<4x18x34xf32> to vector<1x16x32xf32>
    %184 = vector.shape_cast %183 : vector<1x16x32xf32> to vector<16x32xf32>
    %c30 = arith.constant 30 : index
    %185 = memref.load %arg2[%c30] : memref<36xf32, #tpu.memory_space<smem>>
    %186 = vector.broadcast %185 : f32 to vector<16x32xf32>
    %187 = arith.mulf %184, %186 : vector<16x32xf32>
    %188 = arith.addf %182, %187 : vector<16x32xf32>
    %189 = vector.extract_strided_slice %1 {offsets = [3, 1, 1], sizes = [1, 16, 32], strides = [1, 1, 1]} : vector<4x18x34xf32> to vector<1x16x32xf32>
    %190 = vector.shape_cast %189 : vector<1x16x32xf32> to vector<16x32xf32>
    %c31 = arith.constant 31 : index
    %191 = memref.load %arg2[%c31] : memref<36xf32, #tpu.memory_space<smem>>
    %192 = vector.broadcast %191 : f32 to vector<16x32xf32>
    %193 = arith.mulf %190, %192 : vector<16x32xf32>
    %194 = arith.addf %188, %193 : vector<16x32xf32>
    %195 = vector.extract_strided_slice %1 {offsets = [3, 1, 2], sizes = [1, 16, 32], strides = [1, 1, 1]} : vector<4x18x34xf32> to vector<1x16x32xf32>
    %196 = vector.shape_cast %195 : vector<1x16x32xf32> to vector<16x32xf32>
    %c32 = arith.constant 32 : index
    %197 = memref.load %arg2[%c32] : memref<36xf32, #tpu.memory_space<smem>>
    %198 = vector.broadcast %197 : f32 to vector<16x32xf32>
    %199 = arith.mulf %196, %198 : vector<16x32xf32>
    %200 = arith.addf %194, %199 : vector<16x32xf32>
    %201 = vector.extract_strided_slice %1 {offsets = [3, 2, 0], sizes = [1, 16, 32], strides = [1, 1, 1]} : vector<4x18x34xf32> to vector<1x16x32xf32>
    %202 = vector.shape_cast %201 : vector<1x16x32xf32> to vector<16x32xf32>
    %c33 = arith.constant 33 : index
    %203 = memref.load %arg2[%c33] : memref<36xf32, #tpu.memory_space<smem>>
    %204 = vector.broadcast %203 : f32 to vector<16x32xf32>
    %205 = arith.mulf %202, %204 : vector<16x32xf32>
    %206 = arith.addf %200, %205 : vector<16x32xf32>
    %207 = vector.extract_strided_slice %1 {offsets = [3, 2, 1], sizes = [1, 16, 32], strides = [1, 1, 1]} : vector<4x18x34xf32> to vector<1x16x32xf32>
    %208 = vector.shape_cast %207 : vector<1x16x32xf32> to vector<16x32xf32>
    %c34 = arith.constant 34 : index
    %209 = memref.load %arg2[%c34] : memref<36xf32, #tpu.memory_space<smem>>
    %210 = vector.broadcast %209 : f32 to vector<16x32xf32>
    %211 = arith.mulf %208, %210 : vector<16x32xf32>
    %212 = arith.addf %206, %211 : vector<16x32xf32>
    %213 = vector.extract_strided_slice %1 {offsets = [3, 2, 2], sizes = [1, 16, 32], strides = [1, 1, 1]} : vector<4x18x34xf32> to vector<1x16x32xf32>
    %214 = vector.shape_cast %213 : vector<1x16x32xf32> to vector<16x32xf32>
    %c35 = arith.constant 35 : index
    %215 = memref.load %arg2[%c35] : memref<36xf32, #tpu.memory_space<smem>>
    %216 = vector.broadcast %215 : f32 to vector<16x32xf32>
    %217 = arith.mulf %214, %216 : vector<16x32xf32>
    %218 = arith.addf %212, %217 : vector<16x32xf32>
    %c0_4 = arith.constant 0 : index
    %219 = memref.load %arg3[%c0_4] : memref<1xf32, #tpu.memory_space<smem>>
    %220 = vector.broadcast %219 : f32 to vector<16x32xf32>
    %221 = arith.addf %218, %220 : vector<16x32xf32>
    %c0_5 = arith.constant 0 : index
    %c0_6 = arith.constant 0 : index
    %c0_7 = arith.constant 0 : index
    %222 = vector.load %arg4[%c0_5, %c0_6, %c0_7] : memref<1x16x32xf32, #tpu.memory_space<vmem>>, vector<1x16x32xf32>
    %223 = vector.shape_cast %222 : vector<1x16x32xf32> to vector<16x32xf32>
    %224 = vector.shape_cast %221 : vector<16x32xf32> to vector<1x16x32xf32>
    tpu.vector_store %arg4[%c0_5, %c0_6, %c0_7], %224 {strides = array<i32>} : memref<1x16x32xf32, #tpu.memory_space<vmem>>, vector<1x16x32xf32>,
    return
  }
  func.func @transform_0(%arg0: i32) -> (i32, i32, i32, i32) {
    %c0_i32 = arith.constant 0 : i32
    %c0_i32_0 = arith.constant 0 : i32
    %c0_i32_1 = arith.constant 0 : i32
    %c0_i32_2 = arith.constant 0 : i32
    return %arg0, %c0_i32, %c0_i32_0, %c0_i32_1 : i32, i32, i32, i32
  }
  func.func @transform_1(%arg0: i32) -> i32 {
    %c0_i32 = arith.constant 0 : i32
    %c0_i32_0 = arith.constant 0 : i32
    return %c0_i32 : i32
  }
  func.func @transform_2(%arg0: i32) -> i32 {
    %c0_i32 = arith.constant 0 : i32
    %c0_i32_0 = arith.constant 0 : i32
    return %c0_i32 : i32
  }
  func.func @transform_3(%arg0: i32) -> (i32, i32, i32) {
    %c0_i32 = arith.constant 0 : i32
    %c0_i32_0 = arith.constant 0 : i32
    %c0_i32_1 = arith.constant 0 : i32
    return %arg0, %c0_i32, %c0_i32_0 : i32, i32, i32
  }
}

module attributes {stable_mosaic.version = 11 : i64} {
  func.func @_rnn_kernel(%arg0: i32, %arg1: memref<1x128x128xbf16, #tpu.memory_space<vmem>>, %arg2: memref<64x128xf32, #tpu.memory_space<vmem>>, %arg3: memref<128x128xbf16, #tpu.memory_space<vmem>>, %arg4: memref<128x128xf32, #tpu.memory_space<vmem>>, %arg5: memref<1x128xf32, #tpu.memory_space<vmem>>, %arg6: memref<2x64x128xf32, #tpu.memory_space<vmem>>) attributes {dimension_semantics = [#tpu.dimension_semantics<parallel>], iteration_bounds = array<i64: 1>, scalar_prefetch = 0 : i64, scratch_operands = 0 : i64, tpu.core_type = #tpu.core_type<tc>, window_params = [{transform_indices = @transform_0, window_bounds = array<i64: 1, 128, 128>}, {transform_indices = @transform_1, window_bounds = array<i64: 64, 128>}, {pipeline_mode = #tpu.pipeline_mode<synchronous>, transform_indices = @transform_2, window_bounds = array<i64: 128, 128>}, {pipeline_mode = #tpu.pipeline_mode<synchronous>, transform_indices = @transform_3, window_bounds = array<i64: 128, 128>}, {pipeline_mode = #tpu.pipeline_mode<synchronous>, transform_indices = @transform_4, window_bounds = array<i64: 1, 128>}, {transform_indices = @transform_5, window_bounds = array<i64: 2, 64, 128>}]} {
    %c0 = arith.constant 0 : index
    %c0_0 = arith.constant 0 : index
    %c0_1 = arith.constant 0 : index
    %0 = vector.load %arg1[%c0, %c0_0, %c0_1] : memref<1x128x128xbf16, #tpu.memory_space<vmem>>, vector<1x128x128xbf16>
    %1 = vector.shape_cast %0 : vector<1x128x128xbf16> to vector<128x128xbf16>
    %c0_2 = arith.constant 0 : index
    %c0_3 = arith.constant 0 : index
    %2 = vector.load %arg3[%c0_2, %c0_3] : memref<128x128xbf16, #tpu.memory_space<vmem>>, vector<128x128xbf16>
    %cst = arith.constant dense<0.000000e+00> : vector<128x128xf32>
    %3 = tpu.matmul %1, %2, %cst {dimension_numbers = #tpu.dot_dimension_numbers<[1], [0], [0], [1], [0, 0, 1, 1], [], []>} : vector<128x128xbf16>, vector<128x128xbf16>, vector<128x128xf32> -> vector<128x128xf32>
    %c0_4 = arith.constant 0 : index
    %c0_5 = arith.constant 0 : index
    %4 = vector.load %arg5[%c0_4, %c0_5] : memref<1x128xf32, #tpu.memory_space<vmem>>, vector<1x128xf32>
    %5 = vector.broadcast %4 : vector<1x128xf32> to vector<128x128xf32>
    %6 = arith.addf %3, %5 : vector<128x128xf32>
    %c0_6 = arith.constant 0 : index
    %c0_7 = arith.constant 0 : index
    %7 = vector.load %arg2[%c0_6, %c0_7] : memref<64x128xf32, #tpu.memory_space<vmem>>, vector<64x128xf32>
    %8 = vector.extract_strided_slice %6 {offsets = [0, 0], sizes = [64, 128], strides = [1, 1]} : vector<128x128xf32> to vector<64x128xf32>
    %c0_8 = arith.constant 0 : index
    %c0_9 = arith.constant 0 : index
    %9 = vector.load %arg4[%c0_8, %c0_9] : memref<128x128xf32, #tpu.memory_space<vmem>>, vector<128x128xf32>
    %cst_10 = arith.constant dense<0.000000e+00> : vector<64x128xf32>
    %10 = tpu.matmul %7, %9, %cst_10 {dimension_numbers = #tpu.dot_dimension_numbers<[1], [0], [0], [1], [0, 0, 1, 1], [], []>} : vector<64x128xf32>, vector<128x128xf32>, vector<64x128xf32> -> vector<64x128xf32>
    %11 = arith.addf %8, %10 : vector<64x128xf32>
    %12 = math.tanh %11 : vector<64x128xf32>
    %c0_11 = arith.constant 0 : index
    %c0_12 = arith.constant 0 : index
    %c0_13 = arith.constant 0 : index
    %13 = vector.load %arg6[%c0_11, %c0_12, %c0_13] : memref<2x64x128xf32, #tpu.memory_space<vmem>>, vector<1x64x128xf32>
    %14 = vector.shape_cast %13 : vector<1x64x128xf32> to vector<64x128xf32>
    %15 = vector.shape_cast %12 : vector<64x128xf32> to vector<1x64x128xf32>
    tpu.vector_store %arg6[%c0_11, %c0_12, %c0_13], %15 {strides = array<i32>} : memref<2x64x128xf32, #tpu.memory_space<vmem>>, vector<1x64x128xf32>,
    %16 = vector.extract_strided_slice %6 {offsets = [64, 0], sizes = [64, 128], strides = [1, 1]} : vector<128x128xf32> to vector<64x128xf32>
    %c0_14 = arith.constant 0 : index
    %c0_15 = arith.constant 0 : index
    %17 = vector.load %arg4[%c0_14, %c0_15] : memref<128x128xf32, #tpu.memory_space<vmem>>, vector<128x128xf32>
    %cst_16 = arith.constant dense<0.000000e+00> : vector<64x128xf32>
    %18 = tpu.matmul %12, %17, %cst_16 {dimension_numbers = #tpu.dot_dimension_numbers<[1], [0], [0], [1], [0, 0, 1, 1], [], []>} : vector<64x128xf32>, vector<128x128xf32>, vector<64x128xf32> -> vector<64x128xf32>
    %19 = arith.addf %16, %18 : vector<64x128xf32>
    %20 = math.tanh %19 : vector<64x128xf32>
    %c1 = arith.constant 1 : index
    %c0_17 = arith.constant 0 : index
    %c0_18 = arith.constant 0 : index
    %21 = vector.load %arg6[%c1, %c0_17, %c0_18] : memref<2x64x128xf32, #tpu.memory_space<vmem>>, vector<1x64x128xf32>
    %22 = vector.shape_cast %21 : vector<1x64x128xf32> to vector<64x128xf32>
    %23 = vector.shape_cast %20 : vector<64x128xf32> to vector<1x64x128xf32>
    tpu.vector_store %arg6[%c1, %c0_17, %c0_18], %23 {strides = array<i32>} : memref<2x64x128xf32, #tpu.memory_space<vmem>>, vector<1x64x128xf32>,
    return
  }
  func.func @transform_0(%arg0: i32) -> (i32, i32, i32) {
    %c0_i32 = arith.constant 0 : i32
    %c0_i32_0 = arith.constant 0 : i32
    %c0_i32_1 = arith.constant 0 : i32
    return %arg0, %c0_i32, %c0_i32_0 : i32, i32, i32
  }
  func.func @transform_1(%arg0: i32) -> (i32, i32) {
    %c0_i32 = arith.constant 0 : i32
    %c0_i32_0 = arith.constant 0 : i32
    return %arg0, %c0_i32 : i32, i32
  }
  func.func @transform_2(%arg0: i32) -> (i32, i32) {
    %c0_i32 = arith.constant 0 : i32
    %c0_i32_0 = arith.constant 0 : i32
    %c0_i32_1 = arith.constant 0 : i32
    return %c0_i32, %c0_i32_0 : i32, i32
  }
  func.func @transform_3(%arg0: i32) -> (i32, i32) {
    %c0_i32 = arith.constant 0 : i32
    %c0_i32_0 = arith.constant 0 : i32
    %c0_i32_1 = arith.constant 0 : i32
    return %c0_i32, %c0_i32_0 : i32, i32
  }
  func.func @transform_4(%arg0: i32) -> (i32, i32) {
    %c0_i32 = arith.constant 0 : i32
    %c0_i32_0 = arith.constant 0 : i32
    %c0_i32_1 = arith.constant 0 : i32
    return %c0_i32, %c0_i32_0 : i32, i32
  }
  func.func @transform_5(%arg0: i32) -> (i32, i32, i32) {
    %c0_i32 = arith.constant 0 : i32
    %c0_i32_0 = arith.constant 0 : i32
    %c0_i32_1 = arith.constant 0 : i32
    return %c0_i32, %arg0, %c0_i32_0 : i32, i32, i32
  }
}

</mosaic_0001>

<bundles_post_ra>
// kernel: event_net_forward.2
= control target key start
LH: loop header
LB: loop body
LE: loop exit
PB: predicated region body
PF: predicated region fallthrough
CT: control target
= control target key end

     0   :  { %s1412_s0 = inlined_call_operand.vmem [shape: f32[2,4,18,34], index: 0, kind: input, shape index: {}]   ;;  %s1413_s1 = inlined_call_operand.vmem [shape: f32[36], index: 1, kind: input, shape index: {}]   ;;  %s1414_s2 = inlined_call_operand.<no memory space> [shape: f32[1], index: 2, kind: input, shape index: {}]   ;;  %s1415_s3 = inlined_call_operand.vmem [shape: f32[2,16,32], index: 3, kind: output, shape index: {}]  }
   0x1   :  { %8 = sst [smem:[#allocation2]] %s1414_s2 }
   0x2   :  { %9 = vsyncpa [#allocation4], 0  ;;  %s1005_s14 = smov 0  }
   0x3 LB: > { %s882_s15 = sadd.s32 4294967295, %s977_s14   ;;  %p884_p0 = scmp.ge.s32.totalorder %s977_s14, 1  ;;  %s977_s14 = sphi %s1005_s14, %s15_s14  }
   0x4   : > { %p114_p1 = scmp.lt.s32.totalorder %s977_s14, 3  ;;  %s127_s18 = sshll.u32 %s1413_s1, 4  ;;  %s128_s18 = int_to_ptr.vmem [resolvable:$true] %s127_s18 }
   0x5   : > { %p939_p3 = scmp.eq.s32.totalorder %s882_s15, 0  ;;  %s952_s19 = scalar_lea.vmem %s128_s18, 16 }
   0x6   : > { %p1016_p2 = pnand %p884_p0, %p114_p1  ;;  %p953_p6 = scmp.ne.s32.totalorder %s128_s18, %s952_s19 }
   0x7   : > { %p960_p10 = scmp.lt.s32.totalorder %s128_s18, %s128_s18  ;;  %p961_p11 = scmp.lt.s32.totalorder %s952_s19, %s952_s19 }
   0x8   : > { %p935_p4 = pneg %p1016_p2 }
   0x9   : > { %p962_p12 = por %p961_p11, %p960_p10 }
   0xa   : > { %p936_p5 = pnand %p939_p3, %p935_p4 }
   0xc   : > { %p954_p7 = pneg %p936_p5 }
   0xe   : > { %p955_p8 = pnand %p954_p7, %p953_p6 }
  0x10   : > { %p956_p9 = pneg %p955_p8 }
  0x12   : > { %p963_p13 = pnand %p962_p12, %p956_p9 }
  0x14   : > { %966 = shalt.err (!%p963_p13)
}
  0x15   : > { %s979_s20 = smov [#allocation3]   ;;  %151 = sbr.rel (%p1016_p2) target bundleno = 253 (0xfd), region = 32 }
  0x16   : > { %938 = dma.vmem_to_smem (!%p936_p5), %s128_s18, 16, %s979_s20, [#allocation4]  }
  0x1c   : > { %972 = dma.done.wait (%p939_p3), [#allocation4], 16  }
  0x1d   : > { %974 = vsyncadd (%p939_p3), [#allocation4], 4294967280 }
  0x1e   : > { %157 = sfence }
  0x1f   : > { %p176_p0 = scmp.lt.s32.totalorder %s882_s15, 1  ;;  %s893_s21 = sld [smem:[#allocation3 + $0x2]]  ;;  %vm240_vm0 = vcmask 1046528   ;;  %vm300_vm1 = vcmask 1045504   ;;  %vm812_vm2 = vcmask 261120  }
  0x20   : > { %s892_s22 = sld [smem:[#allocation3 + $0x1]]  ;;  %s895_s23 = sld [smem:[#allocation3 + $0x4]] }
  0x21   : > { %s1418_s15 = smov (!%p176_p0, %s882_s15), 1  ;;  %s896_s25 = sld [smem:[#allocation3 + $0x5]] }
  0x22   : > { %s930_s24 = smul.u32 96, %s1418_s15  ;;  %s898_s26 = sld [smem:[#allocation3 + $0x7]] }
  0x23   : > { %s899_s30 = sld [smem:[#allocation3 + $0x8]]  ;;  %s980_s4 = smov 126  }
  0x24   : > { %s1033_s29 = scalar_lea.vmem %s1412_s0, %s930_s24  ;;  %s981_s5 = smov 127  }
  0x25   : > { %v219_v0 = vstv %s893_s21  ;;  %v1036_v1 = vld [vmem:[%s1033_s29] sm:$0xff]  ;;  %v1039_v2 = vld [vmem:[%s1033_s29 + $0x8] sm:$0xff]  ;;  %v1042_v4 = vld [vmem:[%s1033_s29 + $0x10] sm:$0x3]  ;;  %s1067_s6 = sld [smem:[#allocation3 + $0xa]]  ;;  %s904_s7 = sld [smem:[#allocation3 + $0xd]] }
  0x26   : > { %v205_v3 = vstv %s892_s22  ;;  %v220_v5 = vmul.f32 %v219_v0, %v1036_v1  ;;  %v221_v7 = vmul.f32 %v219_v0, %v1039_v2  ;;  %v251_v9 = vstv %s895_s23  ;;  %s905_s8 = sld [smem:[#allocation3 + $0xe]]  ;;  %s907_s9 = sld [smem:[#allocation3 + $0x10]]  ;;  %v1081_v43 = vld [vmem:[%s1033_s29 + $0x20] sm:$0xff]  ;;  %v1087_v47 = vld [vmem:[%s1033_s29 + $0x18] sm:$0xff] }
  0x27   : > { %v206_v6 = vmul.f32 %v205_v3, %v1036_v1  ;;  %v207_v8 = vmul.f32 %v205_v3, %v1039_v2  ;;  %v253_v10 = vmul.f32 %v251_v9, %v1039_v2  ;;  %v254_v11 = vmul.f32 %v251_v9, %v1042_v4  ;;  %s1075_s10 = sld [smem:[#allocation3 + $0xb]]  ;;  %s908_s11 = sld [smem:[#allocation3 + $0x11]]  ;;  %v1090_v48 = vld [vmem:[%s1033_s29 + $0x28] sm:$0x3] }
  0x28   : > { %224 = vrot.lane.b32.xlu1 %v220_v5, %s980_s4  ;;  %v252_v12 = vmul.f32 %v251_v9, %v1036_v1  ;;  %v272_v13 = vstv %s896_s25  ;;  %v311_v17 = vstv %s898_s26  ;;  %s1099_s12 = sld [smem:[#allocation3 + $0x13]]  ;;  %s1108_s13 = sld [smem:[#allocation3 + $0x1f]] }
  0x29   : > { %210 = vrot.lane.b32.xlu0 %v206_v6, %s981_s5  ;;  %v274_v14 = vmul.f32 %v272_v13, %v1039_v2  ;;  %v275_v15 = vmul.f32 %v272_v13, %v1042_v4  ;;  %v273_v16 = vmul.f32 %v272_v13, %v1036_v1  ;;  %v259_v18 = vrot.slane %v253_v10, 1  ;;  %s1110_s16 = sld [smem:[#allocation3 + $0x20]]  ;;  %s1116_s17 = sld [smem:[#allocation3 + $0x16]] }
  0x2a   : > { %v261_v19 = vrot.slane %v254_v11, 1  ;;  %v258_v20 = vrot.slane %v252_v12, 1  ;;  %v313_v21 = vmul.f32 %v311_v17, %v1039_v2  ;;  %v314_v25 = vmul.f32 %v311_v17, %v1042_v4  ;;  %s1119_s18 = sld [smem:[#allocation3 + $0x14]]  ;;  %s1128_s2 = sld [smem:[#allocation3 + $0x17]] }
  0x2b   : > { %v280_v22 = vrot.slane %v274_v14, 1  ;;  %v282_v23 = vrot.slane %v275_v15, 1  ;;  %v279_v24 = vrot.slane %v273_v16, 1  ;;  %v312_v28 = vmul.f32 %v311_v17, %v1036_v1  ;;  %v1125_v17 = vld [vmem:[%s1033_s29 + $0x38] sm:$0xff]  ;;  %s1146_s19 = sld [smem:[#allocation3 + $0x19]]  ;;  %s1153_s20 = sld [smem:[#allocation3 + $0x3]] }
  0x2c   : > { %226 = vrot.lane.b32.xlu1 %v221_v7, %s980_s4  ;;  %v262_v26 = vsel %vm240_vm0, %v259_v18, %v261_v19  ;;  %v260_v27 = vsel %vm240_vm0, %v258_v20, %v259_v18  ;;  %v332_v29 = vstv %s899_s30  ;;  %v319_v32 = vrot.slane %v313_v21, 2  ;;  %s1167_s21 = sld [smem:[#allocation3 + $0x6]]  ;;  %s1186_s22 = sld [smem:[#allocation3 + $0xc]] }
  0x2d   : > { %212 = vrot.lane.b32.xlu0 %v207_v8, %s981_s5  ;;  %v283_v30 = vsel %vm240_vm0, %v280_v22, %v282_v23  ;;  %v281_v31 = vsel %vm240_vm0, %v279_v24, %v280_v22  ;;  %v321_v33 = vrot.slane %v314_v25, 2  ;;  %v318_v34 = vrot.slane %v312_v28, 2  ;;  %v1135_v23 = vld [vmem:[%s1033_s29 + $0x58] sm:$0x3]  ;;  %v1141_v28 = vld [vmem:[%s1033_s29 + $0x50] sm:$0xff]  ;;  %s1212_s23 = sld [smem:[#allocation3 + $0xf]] }
  0x2e   : > { %v334_v35 = vmul.f32 %v332_v29, %v1039_v2  ;;  %v335_v36 = vmul.f32 %v332_v29, %v1042_v4  ;;  %v333_v37 = vmul.f32 %v332_v29, %v1036_v1  ;;  %v359_v44 = vstv %s1067_s6  ;;  %s1229_s24 = sld [smem:[#allocation3 + $0x15]]  ;;  %s1237_s25 = sld [smem:[#allocation3 + $0x18]] }
  0x2f   : > { %v322_v38 = vsel %vm300_vm1, %v319_v32, %v321_v33  ;;  %v320_v39 = vsel %vm300_vm1, %v318_v34, %v319_v32  ;;  %v404_v49 = vstv %s904_s7  ;;  %v425_v50 = vstv %s905_s8  ;;  %s1247_s26 = sld [smem:[#allocation3 + $0x1a]]  ;;  %s921_s27 = sld [smem:[#allocation3 + $0x1e]] }
  0x30   : > { %265 = vrot.lane.b32.xlu1 %v262_v26, %s981_s5  ;;  %v340_v40 = vrot.slane %v334_v35, 2  ;;  %v342_v41 = vrot.slane %v335_v36, 2  ;;  %v339_v42 = vrot.slane %v333_v37, 2  ;;  %v361_v51 = vmul.f32 %v359_v44, %v1081_v43  ;;  %s1305_s28 = sld [smem:[#allocation3 + $0x1c]]  ;;  %s924_s30 = sld [smem:[#allocation3 + $0x21]] }
  0x31   : > { %263 = vrot.lane.b32.xlu0 %v260_v27, %s981_s5  ;;  %v463_v52 = vstv %s907_s9  ;;  %v360_v53 = vmul.f32 %v359_v44, %v1087_v47  ;;  %v373_v54 = vstv %s1075_s10  ;;  %v406_v55 = vmul.f32 %v404_v49, %v1081_v43  ;;  %v1170_v44 = vld [vmem:[%s1033_s29 + $0x30] sm:$0xff]  ;;  %s925_s6 = sld [smem:[#allocation3 + $0x22]]  ;;  %s926_s7 = sld [smem:[#allocation3 + $0x23]] }
  0x32   : > { %v343_v45 = vsel %vm300_vm1, %v340_v40, %v342_v41  ;;  %v341_v46 = vsel %vm300_vm1, %v339_v42, %v340_v40  ;;  %v407_v56 = vmul.f32 %v404_v49, %v1090_v48  ;;  %v405_v57 = vmul.f32 %v404_v49, %v1087_v47  ;;  %s198_s8 = sld [smem:[#allocation3]]  ;;  %s918_s9 = sld [smem:[#allocation3 + $0x1b]] }
  0x33   : > { %v427_v58 = vmul.f32 %v425_v50, %v1081_v43  ;;  %v428_v59 = vmul.f32 %v425_v50, %v1090_v48  ;;  %v426_v60 = vmul.f32 %v425_v50, %v1087_v47  ;;  %v465_v61 = vmul.f32 %v463_v52, %v1081_v43  ;;  %s808_s10 = sld [smem:[#allocation2]] }
  0x34   : > { %286 = vrot.lane.b32.xlu1 %v283_v30, %s980_s4  ;;  %v466_v62 = vmul.f32 %v463_v52, %v1090_v48  ;;  %v464_v63 = vmul.f32 %v463_v52, %v1087_v47  ;;  %v484_v0 = vstv %s908_s11  ;;  %v375_v3 = vmul.f32 %v373_v54, %v1081_v43  ;;  %s929_s11 = sshll.u32 %s1418_s15, 4 }
  0x35   : > { %284 = vrot.lane.b32.xlu0 %v281_v31, %s980_s4  ;;  %v374_v5 = vmul.f32 %v373_v54, %v1087_v47  ;;  %v412_v6 = vrot.slane %v406_v55, 1  ;;  %v414_v7 = vrot.slane %v407_v56, 1  ;;  %v411_v8 = vrot.slane %v405_v57, 1  ;;  %v1149_v31 = vld [vmem:[%s1033_s29 + $0x48] sm:$0xff] }
  0x36   : > { %v433_v9 = vrot.slane %v427_v58, 1  ;;  %v435_v10 = vrot.slane %v428_v59, 1  ;;  %v432_v11 = vrot.slane %v426_v60, 1  ;;  %v471_v12 = vrot.slane %v465_v61, 2 }
  0x37   : > { %v473_v13 = vrot.slane %v466_v62, 2  ;;  %v470_v14 = vrot.slane %v464_v63, 2  ;;  %v486_v15 = vmul.f32 %v484_v0, %v1081_v43  ;;  %v487_v16 = vmul.f32 %v484_v0, %v1090_v48 }
  0x38   : > { %325 = vrot.lane.b32.xlu1 %v322_v38, %s981_s5  ;;  %v511_v18 = vstv %s1099_s12  ;;  %v415_v19 = vsel %vm240_vm0, %v412_v6, %v414_v7  ;;  %v413_v20 = vsel %vm240_vm0, %v411_v8, %v412_v6  ;;  %v436_v21 = vsel %vm240_vm0, %v433_v9, %v435_v10 }
  0x39   : > { %323 = vrot.lane.b32.xlu0 %v320_v39, %s981_s5  ;;  %v485_v22 = vmul.f32 %v484_v0, %v1087_v47  ;;  %v434_v24 = vsel %vm240_vm0, %v432_v11, %v433_v9  ;;  %v474_v25 = vsel %vm300_vm1, %v471_v12, %v473_v13  ;;  %v472_v26 = vsel %vm300_vm1, %v470_v14, %v471_v12  ;;  %v1162_v39 = vld [vmem:[%s1033_s29 + $0x40] sm:$0x3]  ;;  %s1322_s29 = sld [smem:[#allocation3 + $0x1d]] }
  0x3a   : > { %v492_v27 = vrot.slane %v486_v15, 2  ;;  %v494_v29 = vrot.slane %v487_v16, 2  ;;  %v1144_v30 = vmul.f32 %v511_v18, %v1125_v17  ;;  %v708_v32 = vstv %s1108_s13 }
  0x3b   : > { %v729_v33 = vstv %s1110_s16  ;;  %v556_v34 = vstv %s1116_s17  ;;  %v710_v35 = vmul.f32 %v708_v32, %v1141_v28  ;;  %v711_v36 = vmul.f32 %v708_v32, %v1135_v23  ;;  %s185_s16 = scalar_lea.vmem %s1415_s3, %s929_s11 }
  0x3c   : > { %346 = vrot.lane.b32.xlu1 %v343_v45, %s980_s4  ;;  %v709_v37 = vmul.f32 %v708_v32, %v1149_v31  ;;  %v491_v38 = vrot.slane %v485_v22, 2  ;;  %v731_v40 = vmul.f32 %v729_v33, %v1141_v28  ;;  %v732_v41 = vmul.f32 %v729_v33, %v1135_v23 }
  0x3d   : > { %344 = vrot.lane.b32.xlu0 %v341_v46, %s980_s4  ;;  %v730_v42 = vmul.f32 %v729_v33, %v1149_v31  ;;  %v525_v45 = vstv %s1119_s18  ;;  %v716_v46 = vrot.slane %v710_v35, 1  ;;  %v718_v49 = vrot.slane %v711_v36, 1 }
  0x3e   : > { %v715_v50 = vrot.slane %v709_v37, 1  ;;  %v737_v52 = vrot.slane %v731_v40, 1  ;;  %v559_v55 = vmul.f32 %v556_v34, %v1162_v39  ;;  %v577_v56 = vstv %s1128_s2 }
  0x3f   : > { %v736_v54 = vrot.slane %v730_v42, 1  ;;  %v1181_v57 = vsel %vm240_vm0, %v716_v46, %v718_v49  ;;  %v512_v59 = vmul.f32 %v511_v18, %v1170_v44  ;;  %v557_v60 = vmul.f32 %v556_v34, %v1170_v44 }
  0x40   : > { %366 = vrot.lane.b32.xlu1 %v361_v51, %s981_s5  ;;  %v1174_v51 = vmul.f32 %v556_v34, %v1125_v17  ;;  %v1184_v58 = vsel %vm240_vm0, %v715_v50, %v716_v46  ;;  %v495_v63 = vsel %vm300_vm1, %v492_v27, %v494_v29  ;;  %v493_v0 = vsel %vm300_vm1, %v491_v38, %v492_v27 }
  0x41   : > { %364 = vrot.lane.b32.xlu0 %v360_v53, %s981_s5  ;;  %v739_v53 = vrot.slane %v732_v41, 1  ;;  %v1194_v62 = vsel %vm240_vm0, %v736_v54, %v737_v52  ;;  %v1205_v6 = vmul.f32 %v577_v56, %v1125_v17  ;;  %v1208_v7 = vmul.f32 %v577_v56, %v1162_v39 }
  0x42   : > { %v615_v8 = vstv %s1146_s19  ;;  %v233_v9 = vstv %s1153_s20  ;;  %v564_v10 = vrot.slane %v1174_v51, 1  ;;  %v566_v11 = vrot.slane %v559_v55, 1 }
  0x43   : > { %v1191_v61 = vsel %vm240_vm0, %v737_v52, %v739_v53  ;;  %v1218_v12 = vmul.f32 %v577_v56, %v1170_v44  ;;  %v235_v13 = vmul.f32 %v233_v9, %v1039_v2  ;;  %v563_v14 = vrot.slane %v557_v60, 1 }
  0x44   : > { %380 = vrot.lane.b32.xlu1 %v375_v3, %s980_s4  ;;  %v1199_v3 = vmul.f32 %v525_v45, %v1125_v17  ;;  %v236_v15 = vmul.f32 %v233_v9, %v1042_v4  ;;  %v234_v16 = vmul.f32 %v233_v9, %v1036_v1  ;;  %v293_v18 = vstv %s1167_s21 }
  0x45   : > { %378 = vrot.lane.b32.xlu0 %v374_v5, %s980_s4  ;;  %v1202_v5 = vmul.f32 %v525_v45, %v1170_v44  ;;  %v296_v22 = vmul.f32 %v293_v18, %v1042_v4  ;;  %v294_v27 = vmul.f32 %v293_v18, %v1036_v1  ;;  %v587_v29 = vrot.slane %v1208_v7, 1 }
  0x46   : > { %v387_v34 = vstv %s1186_s22  ;;  %v584_v4 = vrot.slane %v1218_v12, 1  ;;  %v618_v38 = vmul.f32 %v615_v8, %v1162_v39  ;;  %v567_v45 = vsel %vm240_vm0, %v564_v10, %v566_v11 }
  0x47   : > { %v304_v33 = vrot.slane %v296_v22, 2  ;;  %v301_v37 = vrot.slane %v294_v27, 2  ;;  %v389_v41 = vmul.f32 %v387_v34, %v1081_v43  ;;  %v390_v42 = vmul.f32 %v387_v34, %v1090_v48 }
  0x48   : > { %418 = vrot.lane.b32.xlu1 %v415_v19, %s981_s5  ;;  %v1225_v19 = vmul.f32 %v615_v8, %v1125_v17  ;;  %v388_v49 = vmul.f32 %v387_v34, %v1087_v47  ;;  %v446_v50 = vstv %s1212_s23  ;;  %v565_v55 = vsel %vm240_vm0, %v563_v14, %v564_v10 }
  0x49   : > { %416 = vrot.lane.b32.xlu0 %v413_v20, %s981_s5  ;;  %v242_v20 = vrot.slane %v235_v13, 1  ;;  %v395_v51 = vrot.slane %v389_v41, 1  ;;  %v397_v52 = vrot.slane %v390_v42, 1  ;;  %v448_v53 = vmul.f32 %v446_v50, %v1081_v43 }
  0x4a   : > { %v449_v54 = vmul.f32 %v446_v50, %v1090_v48  ;;  %v623_v56 = vrot.slane %v1225_v19, 2  ;;  %v394_v60 = vrot.slane %v388_v49, 1  ;;  %v616_v12 = vmul.f32 %v615_v8, %v1170_v44 }
  0x4c   : > { %439 = vrot.lane.b32.xlu1 %v436_v21, %s980_s4  ;;  %v295_v21 = vmul.f32 %v293_v18, %v1039_v2  ;;  %v456_v7 = vrot.slane %v449_v54, 2  ;;  %v1273_v9 = vsel %vm240_vm0, %v394_v60, %v395_v51 }
  0x4d   : > { %437 = vrot.lane.b32.xlu0 %v434_v24, %s980_s4  ;;  %v585_v24 = vrot.slane %v1205_v6, 1 }
  0x4e   : > { %v302_v32 = vrot.slane %v295_v21, 2 }
  0x4f   : > { %v588_v22 = vsel %vm240_vm0, %v585_v24, %v587_v29 }
  0x50   : > { %477 = vrot.lane.b32.xlu1 %v474_v25, %s981_s5  ;;  %v244_v25 = vrot.slane %v236_v15, 1  ;;  %v1250_v40 = vsel %vm300_vm1, %v302_v32, %v304_v33  ;;  %v1256_v46 = vsel %vm300_vm1, %v301_v37, %v302_v32  ;;  %v598_v15 = vstv %s1237_s25 }
  0x51   : > { %475 = vrot.lane.b32.xlu0 %v472_v26, %s981_s5  ;;  %v241_v26 = vrot.slane %v234_v16, 1  ;;  %v599_v8 = vmul.f32 %v598_v15, %v1170_v44  ;;  %v586_v32 = vsel %vm240_vm0, %v584_v4, %v585_v24  ;;  %v622_v37 = vrot.slane %v616_v12, 2 }
  0x52   : > { %v1241_v35 = vsel %vm240_vm0, %v242_v20, %v244_v25  ;;  %v625_v25 = vrot.slane %v618_v38, 2  ;;  %v691_v4 = vstv %s921_s27  ;;  %v750_v12 = vstv %s924_s30 }
  0x53   : > { %v1244_v36 = vsel %vm240_vm0, %v241_v26, %v242_v20  ;;  %v600_v20 = vmul.f32 %v598_v15, %v1125_v17  ;;  %v605_v29 = vrot.slane %v599_v8, 2  ;;  %v694_v49 = vmul.f32 %v691_v4, %v1135_v23 }
  0x54   : > { %498 = vrot.lane.b32.xlu1 %v495_v63, %s980_s4  ;;  %v447_v63 = vmul.f32 %v446_v50, %v1087_v47  ;;  %v626_v24 = vsel %vm300_vm1, %v623_v56, %v625_v25  ;;  %v692_v50 = vmul.f32 %v691_v4, %v1149_v31 }
  0x55   : > { %496 = vrot.lane.b32.xlu0 %v493_v0, %s980_s4  ;;  %v1269_v0 = vsel %vm240_vm0, %v395_v51, %v397_v52  ;;  %v606_v27 = vrot.slane %v600_v20, 2  ;;  %v624_v51 = vsel %vm300_vm1, %v622_v37, %v623_v56  ;;  %v701_v60 = vrot.slane %v694_v49, 1 }
  0x56   : > { %v453_v11 = vrot.slane %v447_v63, 2  ;;  %v698_v63 = vrot.slane %v692_v50, 1  ;;  %v788_v37 = vstv %s926_s7 }
  0x57   : > { %v1317_v6 = vsel %vm300_vm1, %v605_v29, %v606_v27 }
  0x58   : > { %518 = vrot.lane.b32.xlu1 %v1144_v30, %s981_s5  ;;  %v454_v30 = vrot.slane %v448_v53, 2 }
  0x59   : > { %516 = vrot.lane.b32.xlu0 %v512_v59, %s981_s5  ;;  %v539_v59 = vstv %s1229_s24 }
  0x5a   : > { %v541_v48 = vmul.f32 %v539_v59, %v1125_v17  ;;  %v542_v10 = vmul.f32 %v539_v59, %v1162_v39  ;;  %v1283_v13 = vsel %vm300_vm1, %v454_v30, %v456_v7  ;;  %v540_v14 = vmul.f32 %v539_v59, %v1170_v44 }
  0x5b   : > { %v1288_v16 = vsel %vm300_vm1, %v453_v11, %v454_v30  ;;  %v663_v30 = vstv %s1305_s28 }
  0x5c   : > { %532 = vrot.lane.b32.xlu1 %v1199_v3, %s980_s4  ;;  %v547_v18 = vrot.slane %v541_v48, 1  ;;  %v549_v19 = vrot.slane %v542_v10, 1  ;;  %v636_v3 = vstv %s1247_s26  ;;  %v546_v21 = vrot.slane %v540_v14, 1 }
  0x5d   : > { %530 = vrot.lane.b32.xlu0 %v1202_v5, %s980_s4  ;;  %v601_v5 = vmul.f32 %v598_v15, %v1162_v39  ;;  %v638_v38 = vmul.f32 %v636_v3, %v1125_v17  ;;  %v639_v41 = vmul.f32 %v636_v3, %v1162_v39  ;;  %v637_v42 = vmul.f32 %v636_v3, %v1170_v44 }
  0x5e   : > { %v1298_v26 = vsel %vm240_vm0, %v547_v18, %v549_v19  ;;  %v1308_v33 = vsel %vm240_vm0, %v546_v21, %v547_v18  ;;  %v693_v39 = vmul.f32 %v691_v4, %v1141_v28  ;;  %v665_v48 = vmul.f32 %v663_v30, %v1141_v28 }
  0x5f   : > { %v608_v34 = vrot.slane %v601_v5, 2  ;;  %v644_v52 = vrot.slane %v638_v38, 2  ;;  %v646_v53 = vrot.slane %v639_v41, 2  ;;  %v643_v54 = vrot.slane %v637_v42, 2 }
  0x60   : > { %570 = vrot.lane.b32.xlu1 %v567_v45, %s981_s5  ;;  %v664_v10 = vmul.f32 %v663_v30, %v1149_v31  ;;  %v677_v14 = vstv %s1322_s29  ;;  %v752_v15 = vmul.f32 %v750_v12, %v1141_v28  ;;  %v753_v18 = vmul.f32 %v750_v12, %v1135_v23 }
  0x61   : > { %568 = vrot.lane.b32.xlu0 %v565_v55, %s981_s5  ;;  %v1314_v45 = vsel %vm300_vm1, %v606_v27, %v608_v34  ;;  %v699_v55 = vrot.slane %v693_v39, 1  ;;  %v647_v56 = vsel %vm300_vm1, %v644_v52, %v646_v53  ;;  %v645_v11 = vsel %vm300_vm1, %v643_v54, %v644_v52 }
  0x62   : > { %v751_v19 = vmul.f32 %v750_v12, %v1149_v31  ;;  %v758_v20 = vrot.slane %v752_v15, 2  ;;  %v760_v3 = vrot.slane %v753_v18, 2  ;;  %v679_v5 = vmul.f32 %v677_v14, %v1141_v28 }
  0x63   : > { %v1332_v7 = vsel %vm240_vm0, %v699_v55, %v701_v60  ;;  %v1335_v59 = vsel %vm240_vm0, %v698_v63, %v699_v55  ;;  %v678_v8 = vmul.f32 %v677_v14, %v1149_v31  ;;  %v767_v27 = vstv %s925_s6 }
  0x64   : > { %591 = vrot.lane.b32.xlu1 %v588_v22, %s980_s4  ;;  %v757_v21 = vrot.slane %v751_v19, 2  ;;  %v1352_v22 = vsel %vm300_vm1, %v758_v20, %v760_v3  ;;  %v770_v34 = vmul.f32 %v767_v27, %v1135_v23  ;;  %v768_v29 = vmul.f32 %v767_v27, %v1149_v31 }
  0x65   : > { %589 = vrot.lane.b32.xlu0 %v586_v32, %s980_s4  ;;  %v769_v32 = vmul.f32 %v767_v27, %v1141_v28  ;;  %v791_v4 = vmul.f32 %v788_v37, %v1135_v23  ;;  %v789_v39 = vmul.f32 %v788_v37, %v1149_v31 }
  0x66   : > { %v1355_v25 = vsel %vm300_vm1, %v757_v21, %v758_v20  ;;  %v777_v41 = vrot.slane %v770_v34, 2  ;;  %v774_v42 = vrot.slane %v768_v29, 2 }
  0x67   : > { %v775_v38 = vrot.slane %v769_v32, 2  ;;  %v798_v50 = vrot.slane %v791_v4, 2 }
  0x68   : > { %629 = vrot.lane.b32.xlu1 %v626_v24, %s981_s5  ;;  %v790_v24 = vmul.f32 %v788_v37, %v1141_v28 }
  0x69   : > { %627 = vrot.lane.b32.xlu0 %v624_v51, %s981_s5  ;;  %v776_v49 = vsel %vm300_vm1, %v774_v42, %v775_v38  ;;  %v795_v51 = vrot.slane %v789_v39, 2 }
  0x6c   : > { %650 = vrot.lane.b32.xlu1 %v647_v56, %s980_s4 }
  0x6d   : > { %648 = vrot.lane.b32.xlu0 %v645_v11, %s980_s4 }
  0x70   : > { %670 = vrot.lane.b32.xlu1 %v665_v48, %s981_s5 }
  0x71   : > { %668 = vrot.lane.b32.xlu0 %v664_v10, %s981_s5 }
  0x74   : > { %684 = vrot.lane.b32.xlu1 %v679_v5, %s980_s4 }
  0x75   : > { %682 = vrot.lane.b32.xlu0 %v678_v8, %s980_s4 }
  0x78   : > { %722 = vrot.lane.b32.xlu1 %v1181_v57, %s981_s5  ;;  %v778_v57 = vsel %vm300_vm1, %v775_v38, %v777_v41 }
  0x79   : > { %720 = vrot.lane.b32.xlu0 %v1184_v58, %s981_s5  ;;  %v796_v58 = vrot.slane %v790_v24, 2 }
  0x7b   : > { %v799_v23 = vsel %vm300_vm1, %v796_v58, %v798_v50  ;;  %v797_v52 = vsel %vm300_vm1, %v795_v51, %v796_v58 }
  0x7c   : > { %743 = vrot.lane.b32.xlu1 %v1191_v61, %s980_s4  ;;  %v199_v61 = vstv %s198_s8 }
  0x7d   : > { %741 = vrot.lane.b32.xlu0 %v1194_v62, %s980_s4  ;;  %v200_v62 = vmul.f32 %v199_v61, %v1036_v1  ;;  %v201_v60 = vmul.f32 %v199_v61, %v1039_v2 }
  0x80   : > { %781 = vrot.lane.b32.xlu1 %v778_v57, %s981_s5 }
  0x81   : > { %779 = vrot.lane.b32.xlu0 %v776_v49, %s981_s5  ;;  %s900_s5 = sld [smem:[#allocation3 + $0x9]] }
  0x84   : > { %802 = vrot.lane.b32.xlu1 %v799_v23, %s980_s4 }
  0x85   : > { %800 = vrot.lane.b32.xlu0 %v797_v52, %s980_s4  ;;  %s909_s4 = sld [smem:[#allocation3 + $0x12]] }
  0x87   : > { %v353_v32 = vstv %s900_s5 }
  0x88   : > { %v355_v29 = vmul.f32 %v353_v32, %v1081_v43  ;;  %v354_v37 = vmul.f32 %v353_v32, %v1087_v47 }
  0x9a   : > { %v225_v53 = vpop.permute.xlu1 %224 }
  0x9b   : > { %v211_v54 = vpop.permute.xlu0 %210 }
  0x9c   : > { %v216_v55 = vadd.f32 %v211_v54, %v200_v62 }
  0x9e   : > { %v230_v63 = vadd.f32 %v225_v53, %v216_v55  ;;  %v227_v30 = vpop.permute.xlu1 %226 }
  0x9f   : > { %v213_v56 = vpop.permute.xlu0 %212 }
  0xa0   : > { %v217_v11 = vadd.f32 %v213_v56, %v201_v60  ;;  %v248_v48 = vadd.f32 %v1244_v36, %v230_v63 }
  0xa2   : > { %v231_v10 = vadd.f32 %v227_v30, %v217_v11  ;;  %v266_v12 = vpop.permute.xlu1 %265 }
  0xa3   : > { %v264_v14 = vpop.permute.xlu0 %263 }
  0xa4   : > { %v249_v15 = vadd.f32 %v1241_v35, %v231_v10  ;;  %v269_v19 = vadd.f32 %v264_v14, %v248_v48  ;;  %v505_v48 = vstv %s909_s4 }
  0xa6   : > { %v270_v18 = vadd.f32 %v266_v12, %v249_v15  ;;  %v287_v1 = vpop.permute.xlu1 %286  ;;  %v506_v12 = vmul.f32 %v505_v48, %v1170_v44 }
  0xa7   : > { %v285_v20 = vpop.permute.xlu0 %284 }
  0xa8   : > { %v291_v3 = vadd.f32 %v287_v1, %v270_v18  ;;  %v290_v21 = vadd.f32 %v285_v20, %v269_v19 }
  0xaa   : > { %v309_v2 = vadd.f32 %v1250_v40, %v291_v3  ;;  %v308_v5 = vadd.f32 %v1256_v46, %v290_v21  ;;  %v326_v8 = vpop.permute.xlu1 %325 }
  0xab   : > { %v324_v27 = vpop.permute.xlu0 %323 }
  0xac   : > { %v330_v36 = vadd.f32 %v326_v8, %v309_v2  ;;  %v329_v34 = vadd.f32 %v324_v27, %v308_v5 }
  0xae   : > { %v347_v35 = vpop.permute.xlu1 %346 }
  0xaf   : > { %v345_v38 = vpop.permute.xlu0 %344  ;;  %v351_v41 = vadd.f32 %v347_v35, %v330_v36 }
  0xb0   : > { %v350_v42 = vadd.f32 %v345_v38, %v329_v34 }
  0xb1   : > { %v357_v24 = vadd.f32 %v355_v29, %v351_v41 }
  0xb2   : > { %v356_v4 = vadd.f32 %v354_v37, %v350_v42  ;;  %v367_v39 = vpop.permute.xlu1 %366 }
  0xb3   : > { %v365_v57 = vpop.permute.xlu0 %364  ;;  %v371_v40 = vadd.f32 %v367_v39, %v357_v24 }
  0xb4   : > { %v370_v49 = vadd.f32 %v365_v57, %v356_v4  ;;  %v657_v57 = vstv %s918_s9 }
  0xb6   : > { %v381_v46 = vpop.permute.xlu1 %380 }
  0xb7   : > { %v379_v58 = vpop.permute.xlu0 %378  ;;  %v385_v50 = vadd.f32 %v381_v46, %v371_v40 }
  0xb8   : > { %v384_v51 = vadd.f32 %v379_v58, %v370_v49  ;;  %v658_v49 = vmul.f32 %v657_v57, %v1149_v31 }
  0xb9   : > { %v402_v23 = vadd.f32 %v1269_v0, %v385_v50 }
  0xba   : > { %v401_v43 = vadd.f32 %v1273_v9, %v384_v51  ;;  %v419_v52 = vpop.permute.xlu1 %418  ;;  %v507_v9 = vmul.f32 %v505_v48, %v1125_v17 }
  0xbb   : > { %v417_v47 = vpop.permute.xlu0 %416  ;;  %v423_v61 = vadd.f32 %v419_v52, %v402_v23 }
  0xbc   : > { %v422_v62 = vadd.f32 %v417_v47, %v401_v43 }
  0xbe   : > { %v440_v53 = vpop.permute.xlu1 %439 }
  0xbf   : > { %v438_v54 = vpop.permute.xlu0 %437  ;;  %v444_v55 = vadd.f32 %v440_v53, %v423_v61 }
  0xc0   : > { %v443_v60 = vadd.f32 %v438_v54, %v422_v62 }
  0xc1   : > { %v461_v63 = vadd.f32 %v1283_v13, %v444_v55 }
  0xc2   : > { %v460_v30 = vadd.f32 %v1288_v16, %v443_v60  ;;  %v478_v56 = vpop.permute.xlu1 %477 }
  0xc3   : > { %v476_v11 = vpop.permute.xlu0 %475  ;;  %v482_v10 = vadd.f32 %v478_v56, %v461_v63 }
  0xc4   : > { %v481_v0 = vadd.f32 %v476_v11, %v460_v30 }
  0xc6   : > { %v499_v14 = vpop.permute.xlu1 %498 }
  0xc7   : > { %v497_v15 = vpop.permute.xlu0 %496  ;;  %v503_v18 = vadd.f32 %v499_v14, %v482_v10 }
  0xc8   : > { %v502_v19 = vadd.f32 %v497_v15, %v481_v0 }
  0xc9   : > { %v509_v1 = vadd.f32 %v507_v9, %v503_v18 }
  0xca   : > { %v508_v20 = vadd.f32 %v506_v12, %v502_v19  ;;  %v519_v3 = vpop.permute.xlu1 %518 }
  0xcb   : > { %v517_v21 = vpop.permute.xlu0 %516  ;;  %v523_v13 = vadd.f32 %v519_v3, %v509_v1 }
  0xcc   : > { %v522_v2 = vadd.f32 %v517_v21, %v508_v20 }
  0xce   : > { %v533_v16 = vpop.permute.xlu1 %532 }
  0xcf   : > { %v531_v5 = vpop.permute.xlu0 %530  ;;  %v537_v8 = vadd.f32 %v533_v16, %v523_v13 }
  0xd0   : > { %v536_v27 = vadd.f32 %v531_v5, %v522_v2 }
  0xd1   : > { %v554_v32 = vadd.f32 %v1298_v26, %v537_v8 }
  0xd2   : > { %v553_v17 = vadd.f32 %v1308_v33, %v536_v27  ;;  %v571_v36 = vpop.permute.xlu1 %570  ;;  %v659_v33 = vmul.f32 %v657_v57, %v1141_v28 }
  0xd3   : > { %v569_v44 = vpop.permute.xlu0 %568  ;;  %v575_v34 = vadd.f32 %v571_v36, %v554_v32 }
  0xd4   : > { %v574_v29 = vadd.f32 %v569_v44, %v553_v17 }
  0xd6   : > { %v592_v37 = vpop.permute.xlu1 %591 }
  0xd7   : > { %v590_v35 = vpop.permute.xlu0 %589  ;;  %v596_v38 = vadd.f32 %v592_v37, %v575_v34 }
  0xd8   : > { %v595_v41 = vadd.f32 %v590_v35, %v574_v29 }
  0xd9   : > { %v613_v42 = vadd.f32 %v1314_v45, %v596_v38 }
  0xda   : > { %v612_v24 = vadd.f32 %v1317_v6, %v595_v41  ;;  %v630_v4 = vpop.permute.xlu1 %629 }
  0xdb   : > { %v628_v39 = vpop.permute.xlu0 %627  ;;  %v634_v40 = vadd.f32 %v630_v4, %v613_v42 }
  0xdc   : > { %v633_v26 = vadd.f32 %v628_v39, %v612_v24 }
  0xde   : > { %v651_v46 = vpop.permute.xlu1 %650 }
  0xdf   : > { %v649_v58 = vpop.permute.xlu0 %648  ;;  %v655_v50 = vadd.f32 %v651_v46, %v634_v40 }
  0xe0   : > { %v654_v51 = vadd.f32 %v649_v58, %v633_v26 }
  0xe1   : > { %v661_v23 = vadd.f32 %v659_v33, %v655_v50 }
  0xe2   : > { %v660_v43 = vadd.f32 %v658_v49, %v654_v51  ;;  %v671_v52 = vpop.permute.xlu1 %670 }
  0xe3   : > { %v669_v47 = vpop.permute.xlu0 %668  ;;  %v675_v45 = vadd.f32 %v671_v52, %v661_v23 }
  0xe4   : > { %v674_v61 = vadd.f32 %v669_v47, %v660_v43 }
  0xe6   : > { %v685_v6 = vpop.permute.xlu1 %684 }
  0xe7   : > { %v683_v62 = vpop.permute.xlu0 %682  ;;  %v689_v53 = vadd.f32 %v685_v6, %v675_v45 }
  0xe8   : > { %v688_v54 = vadd.f32 %v683_v62, %v674_v61 }
  0xe9   : > { %v706_v55 = vadd.f32 %v1332_v7, %v689_v53 }
  0xea   : > { %v705_v28 = vadd.f32 %v1335_v59, %v688_v54  ;;  %v723_v31 = vpop.permute.xlu1 %722  ;;  %v809_v59 = vstv %s808_s10 }
  0xeb   : > { %v721_v60 = vpop.permute.xlu0 %720  ;;  %v727_v63 = vadd.f32 %v723_v31, %v706_v55 }
  0xec   : > { %v726_v30 = vadd.f32 %v721_v60, %v705_v28 }
  0xee   : > { %v744_v56 = vpop.permute.xlu1 %743 }
  0xef   : > { %v742_v11 = vpop.permute.xlu0 %741  ;;  %v748_v48 = vadd.f32 %v744_v56, %v727_v63 }
  0xf0   : > { %v747_v10 = vadd.f32 %v742_v11, %v726_v30 }
  0xf1   : > { %v765_v0 = vadd.f32 %v1352_v22, %v748_v48 }
  0xf2   : > { %v764_v9 = vadd.f32 %v1355_v25, %v747_v10  ;;  %v782_v12 = vpop.permute.xlu1 %781 }
  0xf3   : > { %v780_v14 = vpop.permute.xlu0 %779  ;;  %v786_v15 = vadd.f32 %v782_v12, %v765_v0 }
  0xf4   : > { %v785_v7 = vadd.f32 %v780_v14, %v764_v9 }
  0xf6   : > { %v803_v18 = vpop.permute.xlu1 %802 }
  0xf7   : > { %v801_v19 = vpop.permute.xlu0 %800  ;;  %v807_v1 = vadd.f32 %v803_v18, %v786_v15 }
  0xf8   : > { %v806_v20 = vadd.f32 %v801_v19, %v785_v7 }
  0xf9   : > { %v811_v3 = vadd.f32 %v809_v59, %v807_v1 }
  0xfa   : > { %v810_v21 = vadd.f32 %v809_v59, %v806_v20 }
  0xfb   : > { %814 = vst.msk [vmem:[%s185_s16 + $0x8] sm:$0xff] %vm812_vm2, %v811_v3 }
  0xfc   : > { %813 = vst.msk [vmem:[%s185_s16] sm:$0xff] %vm812_vm2, %v810_v21 }
  0xfd PF: > { %s15_s14 = sadd.s32 1, %s977_s14  }
  0xfe   : > { %p12_p1 = scmp.ge.s32.totalorder %s15_s14, 4  }
 0x100   :  { %14 = sbr.rel (!%p12_p1) target bundleno = 3 (0x3), region = 67 }
 0x107   :  { %836 = vsyncpa [#allocation4], 1 }
 0x108   :  { %838 = vsyncpa [#allocation4 + $0x1], 1 }

// kernel: event_net_forward.3
= control target key start
LH: loop header
LB: loop body
LE: loop exit
PB: predicated region body
PF: predicated region fallthrough
CT: control target
= control target key end

     0   :  { %s1160_s2 = inlined_call_operand.vmem [shape: bf16[128,128], index: 2, kind: input, shape index: {}]   ;;  %s1161_s3 = inlined_call_operand.vmem [shape: f32[128,128], index: 3, kind: input, shape index: {}]   ;;  %s1162_s0 = inlined_call_operand.vmem [shape: bf16[1,128,128], index: 0, kind: input, shape index: {}]   ;;  %s1163_s1 = inlined_call_operand.vmem [shape: f32[64,128], index: 1, kind: input, shape index: {}]   ;;  %s1164_s4 = inlined_call_operand.vmem [shape: f32[1,128], index: 4, kind: input, shape index: {}]   ;;  %s1165_s5 = inlined_call_operand.vmem [shape: f32[2,64,128], index: 5, kind: output, shape index: {}]  }
   0x1   :  { %v845_v0 = vld [vmem:[%s1160_s2] sm:$0xff]   ;;  %v262_v2 = vld [vmem:[%s1161_s3 + $0x8] sm:$0xff]  ;;  %v263_v5 = vld [vmem:[%s1161_s3 + $0x10] sm:$0xff] }
   0x2   :  { %v261_v1 = vld [vmem:[%s1161_s3] sm:$0xff]  ;;  %645 = vmatprep.subr.bf16.mxu0 %v845_v0  ;;  %v846_v4 = vld [vmem:[%s1160_s2 + $0x8] sm:$0xff]   ;;  %v264_v6 = vld [vmem:[%s1161_s3 + $0x18] sm:$0xff] }
   0x3   :  { %v932_v3 = vpack.c.bf16 %v262_v2, %v261_v1  ;;  %646 = vmatpush3.bf16.msra.mxu0 %v845_v0  ;;  %v944_v7 = vpack.c.bf16 %v264_v6, %v263_v5  ;;  %v847_v8 = vld [vmem:[%s1160_s2 + $0x10] sm:$0xff]   ;;  %v265_v9 = vld [vmem:[%s1161_s3 + $0x20] sm:$0xff]  ;;  %v266_v10 = vld [vmem:[%s1161_s3 + $0x28] sm:$0xff] }
   0x4   :  { %647 = vmatprep.subr.bf16.mxu0 %v846_v4  ;;  %v957_v11 = vpack.c.bf16 %v266_v10, %v265_v9  ;;  %v267_v12 = vld [vmem:[%s1161_s3 + $0x30] sm:$0xff]  ;;  %v268_v13 = vld [vmem:[%s1161_s3 + $0x38] sm:$0xff]  ;;  %v269_v16 = vld [vmem:[%s1161_s3 + $0x40] sm:$0xff] }
   0x5   :  { %766 = vmatprep.subr.bf16.mxu1 %v932_v3  ;;  %v848_v14 = vld [vmem:[%s1160_s2 + $0x18] sm:$0xff]   ;;  %v970_v15 = vpack.c.bf16 %v268_v13, %v267_v12  ;;  %v270_v17 = vld [vmem:[%s1161_s3 + $0x48] sm:$0xff]  ;;  %v849_v18 = vld [vmem:[%s1160_s2 + $0x20] sm:$0xff]  }
   0x6   :  { %768 = vmatpush3.bf16.msra.mxu1 %v932_v3  ;;  %v983_v19 = vpack.c.bf16 %v270_v17, %v269_v16  ;;  %v853_v20 = vld [vmem:[%s1162_s0] sm:$0xff]   ;;  %v271_v22 = vld [vmem:[%s1161_s3 + $0x50] sm:$0xff]  ;;  %v272_v23 = vld [vmem:[%s1161_s3 + $0x58] sm:$0xff] }
   0x7   :  { %770 = vmatprep.subr.bf16.mxu1 %v944_v7  ;;  %648 = vmatpush3.bf16.msra.mxu0 %v846_v4  ;;  %v253_v21 = vld [vmem:[%s1163_s1] sm:$0xff]  ;;  %v850_v24 = vld [vmem:[%s1160_s2 + $0x28] sm:$0xff]   ;;  %v1002_v25 = vpack.c.bf16 %v272_v23, %v271_v22  ;;  %v851_v26 = vld [vmem:[%s1160_s2 + $0x30] sm:$0xff]  }
   0x8   :  { %649 = vmatprep.subr.bf16.mxu0 %v847_v8  ;;  %709 = vmatprep.mubr.f32.mxu1 %v253_v21  ;;  %v273_v27 = vld [vmem:[%s1161_s3 + $0x60] sm:$0xff]  ;;  %v274_v28 = vld [vmem:[%s1161_s3 + $0x68] sm:$0xff]  ;;  %v275_v30 = vld [vmem:[%s1161_s3 + $0x70] sm:$0xff] }
   0x9   :  { %661 = vmatprep.mubr.bf16.mxu0 %v853_v20  ;;  %v789_v29 = vpack.c.bf16 %v274_v28, %v273_v27  ;;  %v276_v31 = vld [vmem:[%s1161_s3 + $0x78] sm:$0xff]  ;;  %v854_v34 = vld [vmem:[%s1162_s0 + $0x8] sm:$0xff]   ;;  %v855_v35 = vld [vmem:[%s1162_s0 + $0x10] sm:$0xff]  }
   0xa   :  { %772 = vmatpush3.bf16.msra.mxu1 %v944_v7  ;;  %v852_v32 = vld [vmem:[%s1160_s2 + $0x38] sm:$0xff]   ;;  %v793_v33 = vpack.c.bf16 %v276_v31, %v275_v30  ;;  %v254_v36 = vld [vmem:[%s1163_s1 + $0x8] sm:$0xff]  ;;  %v255_v37 = vld [vmem:[%s1163_s1 + $0x10] sm:$0xff] }
   0xb   :  { %774 = vmatprep.subr.bf16.mxu1 %v957_v11  ;;  %650 = vmatpush3.bf16.msra.mxu0 %v847_v8  ;;  %v256_v38 = vld [vmem:[%s1163_s1 + $0x18] sm:$0xff]  ;;  %v257_v39 = vld [vmem:[%s1163_s1 + $0x20] sm:$0xff]  ;;  %v258_v41 = vld [vmem:[%s1163_s1 + $0x28] sm:$0xff] }
   0xc   :  { %651 = vmatprep.subr.bf16.mxu0 %v848_v14  ;;  %v856_v40 = vld [vmem:[%s1162_s0 + $0x18] sm:$0xff]   ;;  %v259_v42 = vld [vmem:[%s1163_s1 + $0x30] sm:$0xff]  ;;  %v857_v44 = vld [vmem:[%s1162_s0 + $0x20] sm:$0xff]  }
   0xd   :  { %v260_v43 = vld [vmem:[%s1163_s1 + $0x38] sm:$0xff]  ;;  %v858_v45 = vld [vmem:[%s1162_s0 + $0x28] sm:$0xff]   ;;  %v859_v46 = vld [vmem:[%s1162_s0 + $0x30] sm:$0xff]  }
   0xe   :  { %776 = vmatpush3.bf16.msra.mxu1 %v957_v11  ;;  %v860_v47 = vld [vmem:[%s1162_s0 + $0x38] sm:$0xff]   ;;  %v1094_v48 = vld [vmem:[%s1164_s4] ss:$0 sm:$0xff] }
   0xf   :  { %778 = vmatprep.subr.bf16.mxu1 %v970_v15  ;;  %652 = vmatpush3.bf16.msra.mxu0 %v848_v14 }
  0x10   :  { %653 = vmatprep.subr.bf16.mxu0 %v849_v18 }
  0x12   :  { %780 = vmatpush3.bf16.msra.mxu1 %v970_v15 }
  0x13   :  { %782 = vmatprep.subr.bf16.mxu1 %v983_v19  ;;  %654 = vmatpush3.bf16.msra.mxu0 %v849_v18 }
  0x14   :  { %655 = vmatprep.subr.bf16.mxu0 %v850_v24 }
  0x16   :  { %784 = vmatpush3.bf16.msra.mxu1 %v983_v19 }
  0x17   :  { %786 = vmatprep.subr.bf16.mxu1 %v1002_v25  ;;  %656 = vmatpush3.bf16.msra.mxu0 %v850_v24 }
  0x18   :  { %657 = vmatprep.subr.bf16.mxu0 %v851_v26 }
  0x1a   :  { %788 = vmatpush3.bf16.msra.mxu1 %v1002_v25 }
  0x1b   :  { %790 = vmatprep.subr.bf16.mxu1 %v789_v29  ;;  %658 = vmatpush3.bf16.msra.mxu0 %v851_v26 }
  0x1c   :  { %659 = vmatprep.subr.bf16.mxu0 %v852_v32 }
  0x1e   :  { %792 = vmatpush3.bf16.msra.mxu1 %v789_v29 }
  0x1f   :  { %794 = vmatprep.subr.bf16.mxu1 %v793_v33  ;;  %660 = vmatpush3.bf16.msra.mxu0 %v852_v32 }
  0x20   :  { %798 = vmatprep.subr.bf16.mxu0 %v932_v3 }
  0x22   :  { %796 = vmatpush3.bf16.msra.mxu1 %v793_v33  ;;  %662 = vmatmul.mubr.bf16.vlgmr.msra.gmra.mrb[0].mxu0 %v854_v34 }
  0x23   :  { %829 = vmatprep.subr.bf16.mxu1 %v932_v3  ;;  %665 = vmatprep.mubr.bf16.mxu0 %v855_v35 }
  0x24   :  { %800 = vmatpush3.bf16.msra.mxu0 %v932_v3 }
  0x25   :  { %710 = vmatmul.mubr.f32.vlgmr.msra.gmra.mrb[0].mxu1 %v254_v36  ;;  %802 = vmatprep.subr.bf16.mxu0 %v944_v7 }
  0x26   :  { %712 = vmatprep.mubr.f32.mxu1 %v255_v37  ;;  %837 = vmatpush3.bf16.msra.mxu1 %v932_v3 }
  0x27   :  { %830 = vmatprep.subr.bf16.mxu1 %v944_v7 }
  0x28   :  { %804 = vmatpush3.bf16.msra.mxu0 %v944_v7 }
  0x29   :  { %713 = vmatmul.mubr.f32.gmra.mrb[2].mxu1 %v256_v38  ;;  %806 = vmatprep.subr.bf16.mxu0 %v957_v11 }
  0x2a   :  { %715 = vmatprep.mubr.f32.mxu1 %v257_v39  ;;  %838 = vmatpush3.bf16.msra.mxu1 %v944_v7 }
  0x2b   :  { %666 = vmatmul.mubr.bf16.gmra.mrb[4].mxu0 %v856_v40  ;;  %831 = vmatprep.subr.bf16.mxu1 %v957_v11 }
  0x2c   :  { %808 = vmatpush3.bf16.msra.mxu0 %v957_v11  ;;  %669 = vmatprep.mubr.bf16.mxu0 %v857_v44 }
  0x2d   :  { %716 = vmatmul.mubr.f32.gmra.mrb[4].mxu1 %v258_v41  ;;  %810 = vmatprep.subr.bf16.mxu0 %v970_v15 }
  0x2e   :  { %718 = vmatprep.mubr.f32.mxu1 %v259_v42  ;;  %839 = vmatpush3.bf16.msra.mxu1 %v957_v11 }
  0x2f   :  { %832 = vmatprep.subr.bf16.mxu1 %v970_v15 }
  0x30   :  { %812 = vmatpush3.bf16.msra.mxu0 %v970_v15 }
  0x31   :  { %719 = vmatmul.mubr.f32.gmra.mrb[6].mxu1 %v260_v43  ;;  %814 = vmatprep.subr.bf16.mxu0 %v983_v19 }
  0x32   :  { %840 = vmatpush3.bf16.msra.mxu1 %v970_v15 }
  0x33   :  { %833 = vmatprep.subr.bf16.mxu1 %v983_v19  ;;  %670 = vmatmul.mubr.bf16.gmra.mrb[8].mxu0 %v858_v45 }
  0x34   :  { %816 = vmatpush3.bf16.msra.mxu0 %v983_v19  ;;  %673 = vmatprep.mubr.bf16.mxu0 %v859_v46 }
  0x35   :  { %818 = vmatprep.subr.bf16.mxu0 %v1002_v25 }
  0x36   :  { %841 = vmatpush3.bf16.msra.mxu1 %v983_v19 }
  0x37   :  { %834 = vmatprep.subr.bf16.mxu1 %v1002_v25 }
  0x38   :  { %820 = vmatpush3.bf16.msra.mxu0 %v1002_v25 }
  0x39   :  { %822 = vmatprep.subr.bf16.mxu0 %v789_v29 }
  0x3a   :  { %842 = vmatpush3.bf16.msra.mxu1 %v1002_v25 }
  0x3b   :  { %835 = vmatprep.subr.bf16.mxu1 %v789_v29  ;;  %674 = vmatmul.mubr.bf16.gmra.mrb[12].mxu0 %v860_v47 }
  0x3c   :  { %824 = vmatpush3.bf16.msra.mxu0 %v789_v29 }
  0x3d   :  { %826 = vmatprep.subr.bf16.mxu0 %v793_v33 }
  0x3e   :  { %843 = vmatpush3.bf16.msra.mxu1 %v789_v29 }
  0x3f   :  { %836 = vmatprep.subr.bf16.mxu1 %v793_v33 }
  0x40   :  { %828 = vmatpush3.bf16.msra.mxu0 %v793_v33 }
  0x42   :  { %844 = vmatpush3.bf16.msra.mxu1 %v793_v33 }
  0xf5   :  { %v663_v49 = vpop.f32.mrb[0].mxu0 }
  0xf6   :  { %v190_v50 = vpop.f32.mrb[1].mxu0  ;;  %v199_v59 = vadd.f32 %v663_v49, %v1094_v48 }
  0xf7   :  { %v191_v51 = vadd.f32 %v1094_v48, %v190_v50  ;;  %v664_v52 = vpop.f32.mrb[2].mxu0 }
  0xf8   :  { %v711_v53 = vpop.f32.mrb[0].mxu1  ;;  %v202_v54 = vadd.f32 %v664_v52, %v1094_v48  ;;  %v193_v55 = vpop.f32.mrb[3].mxu0 }
  0xf9   :  { %v343_v56 = vpop.f32.mrb[1].mxu1  ;;  %v194_v57 = vadd.f32 %v1094_v48, %v193_v55 }
  0xfa   :  { %v382_v58 = vadd.f32 %v343_v56, %v191_v51 }
  0xfb   :  { %v383_v60 = vadd.f32 %v711_v53, %v194_v57 }
  0xfc   :  { %861 = vtanh.f32 %v382_v58  ;;  %v714_v61 = vpop.f32.mrb[2].mxu1 }
  0xfd   :  { %v385_v62 = vadd.f32 %v714_v61, %v202_v54  ;;  %v353_v63 = vpop.f32.mrb[3].mxu1  ;;  %863 = vtanh.f32 %v383_v60 }
  0xfe   :  { %v384_v0 = vadd.f32 %v353_v63, %v199_v59  ;;  %v667_v1 = vpop.f32.mrb[4].mxu0 }
  0xff   :  { %865 = vtanh.f32 %v385_v62  ;;  %v206_v2 = vpop.f32.mrb[5].mxu0  ;;  %v215_v11 = vadd.f32 %v667_v1, %v1094_v48 }
 0x100   :  { %867 = vtanh.f32 %v384_v0  ;;  %v207_v3 = vadd.f32 %v1094_v48, %v206_v2  ;;  %v668_v4 = vpop.f32.mrb[6].mxu0  ;;  %v717_v5 = vpop.f32.mrb[4].mxu1 }
 0x101   :  { %v218_v6 = vadd.f32 %v668_v4, %v1094_v48  ;;  %v209_v7 = vpop.f32.mrb[7].mxu0  ;;  %v363_v8 = vpop.f32.mrb[5].mxu1 }
 0x102   :  { %v210_v9 = vadd.f32 %v1094_v48, %v209_v7  ;;  %v386_v10 = vadd.f32 %v363_v8, %v207_v3 }
 0x104   :  { %v387_v12 = vadd.f32 %v717_v5, %v210_v9  ;;  %869 = vtanh.f32 %v386_v10  ;;  %v720_v13 = vpop.f32.mrb[6].mxu1 }
 0x105   :  { %v389_v14 = vadd.f32 %v720_v13, %v218_v6  ;;  %v373_v15 = vpop.f32.mrb[7].mxu1 }
 0x106   :  { %v862_v16 = vpop.eup %861  ;;  %871 = vtanh.f32 %v387_v12  ;;  %v388_v17 = vadd.f32 %v373_v15, %v215_v11  ;;  %v671_v25 = vpop.f32.mrb[8].mxu0 }
 0x107   :  { %398 = vst [vmem:[%s1165_s5] sm:$0xff] %v862_v16  ;;  %873 = vtanh.f32 %v389_v14  ;;  %753 = vmatprep.mubr.f32.mxu0 %v862_v16  ;;  %v864_v18 = vpop.eup %863  ;;  %v222_v26 = vpop.f32.mrb[9].mxu0  ;;  %v231_v40 = vadd.f32 %v671_v25, %v1094_v48 }
 0x108   :  { %875 = vtanh.f32 %v388_v17  ;;  %399 = vst [vmem:[%s1165_s5 + $0x8] sm:$0xff] %v864_v18  ;;  %754 = vmatmul.mubr.f32.vlgmr.msra.gmra.mrb[16].mxu0 %v864_v18  ;;  %v672_v27 = vpop.f32.mrb[10].mxu0  ;;  %v223_v34 = vadd.f32 %v1094_v48, %v222_v26 }
 0x109   :  { %v866_v19 = vpop.eup %865  ;;  %v225_v28 = vpop.f32.mrb[11].mxu0  ;;  %v234_v39 = vadd.f32 %v672_v27, %v1094_v48 }
 0x10a   :  { %v868_v20 = vpop.eup %867  ;;  %401 = vst [vmem:[%s1165_s5 + $0x18] sm:$0xff] %v866_v19  ;;  %v226_v33 = vadd.f32 %v1094_v48, %v225_v28 }
 0x10b   :  { %400 = vst [vmem:[%s1165_s5 + $0x10] sm:$0xff] %v868_v20  ;;  %756 = vmatprep.mubr.f32.mxu0 %v868_v20 }
 0x10c   :  { %757 = vmatmul.mubr.f32.gmra.mrb[18].mxu0 %v866_v19 }
 0x10e   :  { %v870_v21 = vpop.eup %869  ;;  %v675_v29 = vpop.f32.mrb[12].mxu0 }
 0x10f   :  { %402 = vst [vmem:[%s1165_s5 + $0x20] sm:$0xff] %v870_v21  ;;  %759 = vmatprep.mubr.f32.mxu1 %v870_v21  ;;  %v238_v30 = vpop.f32.mrb[13].mxu0  ;;  %v247_v53 = vadd.f32 %v675_v29, %v1094_v48 }
 0x110   :  { %v872_v22 = vpop.eup %871  ;;  %v676_v31 = vpop.f32.mrb[14].mxu0  ;;  %v239_v46 = vadd.f32 %v1094_v48, %v238_v30 }
 0x111   :  { %v874_v23 = vpop.eup %873  ;;  %403 = vst [vmem:[%s1165_s5 + $0x28] sm:$0xff] %v872_v22  ;;  %760 = vmatmul.mubr.f32.vlgmr.msra.gmra.mrb[8].mxu1 %v872_v22  ;;  %v241_v32 = vpop.f32.mrb[15].mxu0  ;;  %v250_v52 = vadd.f32 %v676_v31, %v1094_v48 }
 0x112   :  { %v876_v24 = vpop.eup %875  ;;  %405 = vst [vmem:[%s1165_s5 + $0x38] sm:$0xff] %v874_v23  ;;  %v242_v45 = vadd.f32 %v1094_v48, %v241_v32 }
 0x113   :  { %404 = vst [vmem:[%s1165_s5 + $0x30] sm:$0xff] %v876_v24  ;;  %762 = vmatprep.mubr.f32.mxu1 %v876_v24 }
 0x115   :  { %763 = vmatmul.mubr.f32.gmra.mrb[10].mxu1 %v874_v23 }
 0x1db   :  { %v755_v35 = vpop.f32.mrb[16].mxu0 }
 0x1dc   :  { %v528_v36 = vadd.f32 %v755_v35, %v226_v33  ;;  %v488_v37 = vpop.f32.mrb[17].mxu0 }
 0x1dd   :  { %v527_v38 = vadd.f32 %v488_v37, %v223_v34 }
 0x1de   :  { %877 = vtanh.f32 %v528_v36 }
 0x1df   :  { %879 = vtanh.f32 %v527_v38  ;;  %v758_v41 = vpop.f32.mrb[18].mxu0 }
 0x1e0   :  { %v530_v42 = vadd.f32 %v758_v41, %v234_v39  ;;  %v498_v43 = vpop.f32.mrb[19].mxu0 }
 0x1e1   :  { %v529_v44 = vadd.f32 %v498_v43, %v231_v40 }
 0x1e2   :  { %881 = vtanh.f32 %v530_v42 }
 0x1e3   :  { %883 = vtanh.f32 %v529_v44 }
 0x1e4   :  { %v761_v47 = vpop.f32.mrb[8].mxu1 }
 0x1e5   :  { %v532_v49 = vadd.f32 %v761_v47, %v242_v45  ;;  %v508_v50 = vpop.f32.mrb[9].mxu1 }
 0x1e6   :  { %v531_v51 = vadd.f32 %v508_v50, %v239_v46 }
 0x1e7   :  { %885 = vtanh.f32 %v532_v49 }
 0x1e8   :  { %887 = vtanh.f32 %v531_v51  ;;  %v764_v54 = vpop.f32.mrb[10].mxu1  ;;  %v878_v55 = vpop.eup %877 }
 0x1e9   :  { %v534_v56 = vadd.f32 %v764_v54, %v250_v52  ;;  %v518_v57 = vpop.f32.mrb[11].mxu1  ;;  %v880_v58 = vpop.eup %879  ;;  %574 = vst [vmem:[%s1165_s5 + $0x48] sm:$0xff] %v878_v55 }
 0x1ea   :  { %v533_v59 = vadd.f32 %v518_v57, %v247_v53  ;;  %573 = vst [vmem:[%s1165_s5 + $0x40] sm:$0xff] %v880_v58 }
 0x1eb   :  { %889 = vtanh.f32 %v534_v56 }
 0x1ec   :  { %891 = vtanh.f32 %v533_v59  ;;  %v882_v60 = vpop.eup %881 }
 0x1ed   :  { %v884_v61 = vpop.eup %883  ;;  %576 = vst [vmem:[%s1165_s5 + $0x58] sm:$0xff] %v882_v60 }
 0x1ee   :  { %575 = vst [vmem:[%s1165_s5 + $0x50] sm:$0xff] %v884_v61 }
 0x1f1   :  { %v886_v48 = vpop.eup %885 }
 0x1f2   :  { %v888_v62 = vpop.eup %887  ;;  %578 = vst [vmem:[%s1165_s5 + $0x68] sm:$0xff] %v886_v48 }
 0x1f3   :  { %577 = vst [vmem:[%s1165_s5 + $0x60] sm:$0xff] %v888_v62 }
 0x1f5   :  { %v890_v63 = vpop.eup %889 }
 0x1f6   :  { %v892_v0 = vpop.eup %891  ;;  %580 = vst [vmem:[%s1165_s5 + $0x78] sm:$0xff] %v890_v63 }
 0x1f7   :  { %579 = vst [vmem:[%s1165_s5 + $0x70] sm:$0xff] %v892_v0 }

</bundles_post_ra>
